<compile_context>
chip_gen: v7x
topology: tpu7x:2x2x1
jax: 0.10.0
libtpu: 0.0.40
codegen_flags: <defaults>
</compile_context>

<pallas_src>
import jax
import jax.numpy as jnp
from jax.experimental import pallas as pl
from jax.experimental.pallas import tpu as pltpu


def _nearest_upsample2x_kernel(x_ref, o_ref):
    # x_ref: (1, Ct, Ht, W)  ->  o_ref: (1, Ct, Ht, 4*W)
    # o_ref is the contiguous view (n, c, h, 2, 2w) of the (n, c, 2h, 2w) output,
    # so the H interleave is pure layout; only the W interleave is computed here.
    x = x_ref[...]
    w = x.shape[-1]
    yw = jnp.repeat(x, 2, axis=-1)          # nearest-neighbour W doubling -> (..., 2w)
    # TODO(synk): if the bundle dump shows a VMEM relayout copy for the lane-axis
    # repeat, replace it with an explicit even/odd shuffle (pltpu.roll / strided
    # stores) so output vregs are produced exactly once.
    o_ref[:, :, :, 0:2 * w] = yw            # output rows 2i   (first H copy)
    o_ref[:, :, :, 2 * w:4 * w] = yw        # output rows 2i+1 (second H copy)


def _largest_divisor_leq(x, cap, multiple_of=1):
    cap = min(x, max(1, cap))
    for d in range(cap, 0, -1):
        if x % d == 0 and d % multiple_of == 0:
            return d
    return None


def _vmem_budget():
    """Return (tile budget bytes, scoped-vmem limit bytes) for this chip."""
    try:
        phys = int(pltpu.get_tpu_info().vmem_capacity_bytes)
    except Exception:  # query unavailable: assume the smallest (v7x per-TC 64 MiB)
        phys = 64 * 1024 * 1024
    # Tiles (with the over-counted per-unit factor below) use at most ~half the
    # physical VMEM; the scoped limit sits above that with headroom for Mosaic
    # internal scratch.  v7x (64 MiB): budget 32 / limit 48 MiB.
    # v5e & v6e (128 MiB): budget 48 / limit 64 MiB.
    budget = min(phys // 2, 48 * 1024 * 1024)
    limit = min(phys - 8 * 1024 * 1024, budget + 16 * 1024 * 1024)
    return budget, limit


def _choose_tiles(n, c, h, w, itemsize, budget_bytes):
    """Pick (Ct, Ht) channel/height tile sizes.

    Per grid step VMEM footprint per (Ct x Ht) unit of width w:
        double-buffered input tile   2 * 1
        double-buffered output tile  2 * 4
        in-kernel temporaries        ~3  (loaded x + W-repeat intermediate)
        margin                       ~3
    => ~16 * w * itemsize bytes.  Deliberately over-counted so the real footprint
    (including compiler internal scratch) stays under the scoped-VMEM limit.
    """
    per_unit = 16 * w * itemsize
    max_units = max(1, budget_bytes // per_unit)
    # Second-minor dim of the *input* block is Ht -> sublane packing constraint.
    sublane = 8 * max(1, 4 // itemsize)      # 8 f32 / 16 bf16 / 32 int8

    if c * h <= max_units:
        ct, ht = c, h
    elif max_units >= h:
        # Tile channels first (keeps full H x W planes; no sublane issues).
        ct = _largest_divisor_leq(c, max_units // h) or 1
        ht = h
    else:
        ct = 1
        ht = _largest_divisor_leq(h, max_units, multiple_of=sublane)
        if ht is None:
            # TODO(synk): pad/mask H for shapes with no sublane-aligned divisor;
            # fall back to full H (vmem_limit_bytes gives extra headroom).
            ht = h

    # Megacore (v7x): guarantee >= 2 grid steps so the second TensorCore is used
    # when the whole tensor fits a single tile.  Harmless on v5e/v6e.
    if n * (c // ct) * (h // ht) < 2:
        if c > 1:
            ct = _largest_divisor_leq(c, max(1, c // 2)) or ct
        else:
            half_h = _largest_divisor_leq(h, max(1, h // 2), multiple_of=sublane)
            if half_h is not None:
                ht = half_h
            # else: tensor too small to split cleanly; a single step is fine.
    return ct, ht


def wrap_function_forward(x):
    """Forward of WrapFunction(F.interpolate(scale_factor=2, mode='nearest'))."""
    n, c, h, w = x.shape
    itemsize = jnp.dtype(x.dtype).itemsize
    budget_bytes, vmem_limit = _vmem_budget()
    ct, ht = _choose_tiles(n, c, h, w, itemsize, budget_bytes)
    grid = (n, c // ct, h // ht)

    out_flat = pl.pallas_call(
        _nearest_upsample2x_kernel,
        # Contiguous row-major view of the final (n, c, 2h, 2w) output.
        out_shape=jax.ShapeDtypeStruct((n, c, h, 4 * w), x.dtype),
        grid_spec=pltpu.PrefetchScalarGridSpec(
            num_scalar_prefetch=0,
            grid=grid,
            in_specs=[
                pl.BlockSpec((1, ct, ht, w), lambda i, j, k: (i, j, k, 0)),
            ],
            out_specs=pl.BlockSpec((1, ct, ht, 4 * w),
                                   lambda i, j, k: (i, j, k, 0)),
        ),
        compiler_params=pltpu.CompilerParams(
            dimension_semantics=("parallel", "parallel", "parallel"),
            vmem_limit_bytes=vmem_limit),
        cost_estimate=pl.CostEstimate(
            flops=0, transcendentals=0,
            bytes_accessed=5 * n * c * h * w * itemsize),
    )(x)

    # Free reshape: (n, c, h, 4w) row-major is bit-identical to (n, c, 2h, 2w).
    return out_flat.reshape(n, c, 2 * h, 2 * w)


if __name__ == "__main__":
    key = jax.random.PRNGKey(0)
    x = jax.random.normal(key, (2, 4, 16, 16), dtype=jnp.float32)

    y = jax.block_until_ready(wrap_function_forward(x))

    # Plain-JAX reference for nearest-neighbour 2x upsampling (matches
    # torch.nn.functional.interpolate(x, scale_factor=2) default 'nearest').
    ref = jnp.repeat(jnp.repeat(x, 2, axis=2), 2, axis=3)
    assert y.shape == (2, 4, 32, 32)
    assert y.dtype == x.dtype
    assert jnp.allclose(y, ref), "mismatch vs nearest-neighbour reference"

    print("KERNEL_OK")
</pallas_src>

<mosaic_0001>
module attributes {stable_mosaic.version = 11 : i64} {
  func.func @_nearest_upsample2x_kernel(%arg0: i32, %arg1: i32, %arg2: i32, %arg3: memref<1x4x16x16xf32, #tpu.memory_space<vmem>>, %arg4: memref<1x4x16x64xf32, #tpu.memory_space<vmem>>) attributes {dimension_semantics = [#tpu.dimension_semantics<parallel>, #tpu.dimension_semantics<parallel>, #tpu.dimension_semantics<parallel>], iteration_bounds = array<i64: 2, 1, 1>, scalar_prefetch = 0 : i64, scratch_operands = 0 : i64, tpu.core_type = #tpu.core_type<tc>, window_params = [{transform_indices = @transform_0, window_bounds = array<i64: 1, 4, 16, 16>}, {transform_indices = @transform_1, window_bounds = array<i64: 1, 4, 16, 64>}]} {
    %c0 = arith.constant 0 : index
    %c0_0 = arith.constant 0 : index
    %c0_1 = arith.constant 0 : index
    %c0_2 = arith.constant 0 : index
    %0 = vector.load %arg3[%c0, %c0_0, %c0_1, %c0_2] : memref<1x4x16x16xf32, #tpu.memory_space<vmem>>, vector<1x4x16x16xf32>
    %1 = vector.shape_cast %0 : vector<1x4x16x16xf32> to vector<1x4x16x16x1xf32>
    %2 = vector.broadcast %1 : vector<1x4x16x16x1xf32> to vector<1x4x16x16x2xf32>
    %3 = vector.shape_cast %2 : vector<1x4x16x16x2xf32> to vector<1x4x16x32xf32>
    %c0_3 = arith.constant 0 : index
    %c0_4 = arith.constant 0 : index
    %c0_5 = arith.constant 0 : index
    %c0_6 = arith.constant 0 : index
    %4 = vector.load %arg4[%c0_3, %c0_4, %c0_5, %c0_6] : memref<1x4x16x64xf32, #tpu.memory_space<vmem>>, vector<1x4x16x32xf32>
    tpu.vector_store %arg4[%c0_3, %c0_4, %c0_5, %c0_6], %3 {strides = array<i32>} : memref<1x4x16x64xf32, #tpu.memory_space<vmem>>, vector<1x4x16x32xf32>,
    %c0_7 = arith.constant 0 : index
    %c0_8 = arith.constant 0 : index
    %c0_9 = arith.constant 0 : index
    %c32 = arith.constant 32 : index
    %5 = vector.load %arg4[%c0_7, %c0_8, %c0_9, %c32] : memref<1x4x16x64xf32, #tpu.memory_space<vmem>>, vector<1x4x16x32xf32>
    tpu.vector_store %arg4[%c0_7, %c0_8, %c0_9, %c32], %3 {strides = array<i32>} : memref<1x4x16x64xf32, #tpu.memory_space<vmem>>, vector<1x4x16x32xf32>,
    return
  }
  func.func @transform_0(%arg0: i32, %arg1: i32, %arg2: i32) -> (i32, i32, i32, i32) {
    %c0_i32 = arith.constant 0 : i32
    %c0_i32_0 = arith.constant 0 : i32
    return %arg0, %arg1, %arg2, %c0_i32 : i32, i32, i32, i32
  }
  func.func @transform_1(%arg0: i32, %arg1: i32, %arg2: i32) -> (i32, i32, i32, i32) {
    %c0_i32 = arith.constant 0 : i32
    %c0_i32_0 = arith.constant 0 : i32
    return %arg0, %arg1, %arg2, %c0_i32 : i32, i32, i32, i32
  }
}

</mosaic_0001>

<bundles_post_ra>
// kernel: tpu_custom_call.1
= control target key start
LH: loop header
LB: loop body
LE: loop exit
PB: predicated region body
PF: predicated region fallthrough
CT: control target
= control target key end

     0   :  { %6 = vsyncpa [#allocation3], 0  ;;  %s6449_s0 = inlined_call_operand.hbm [shape: f32[2,4,16,16], index: 0, kind: input, shape index: {}]   ;;  %s6450_s1 = inlined_call_operand.hbm [shape: f32[2,4,16,64], index: 1, kind: output, shape index: {}]  }
   0x1   :  { %8 = vsyncpa [#allocation3 + $0x1], 0 }
   0x2   :  { %9 = vsyncpa [#allocation4], 0 }
   0x3   :  { %11 = vsyncpa [#allocation4 + $0x1], 0  ;;  %s4084_s6 = smov 0   ;;  %s4086_s7 = smov 0  }
   0x4   :  { %s4088_s8 = smov 0   ;;  %s4090_s9 = smov 0  }
   0x5   :  { %s4092_s10 = smov 0   ;;  %s4094_s11 = smov 0  }
   0x6 LB: > { %s3837_s12 = sadd.s32 4294967295, %s4049_s11   ;;  %s3838_s13 = sadd.s32 4294967294, %s4049_s11   ;;  %s4049_s11 = sphi %s4094_s11, %s17_s11   ;;  %s4045_s10 = sphi %s4092_s10, %s6855_s10   ;;  %s4041_s9 = sphi %s4090_s9, %s6854_s9   ;;  %s4037_s8 = sphi %s4088_s8, %s6853_s8   ;;  %s4033_s7 = sphi %s4086_s7, %s6852_s7   ;;  %s4029_s6 = sphi %s4084_s6, %s6851_s6  }
   0x7   : > { %s36_s14 = sadd.s32 1, %s4045_s10  ;;  %s47_s15 = sadd.s32 1, %s4037_s8 }
   0x8   : > { %p38_p0 = scmp.ge.s32.totalorder %s36_s14, 2  ;;  %p54_p1 = scmp.ne.s32.totalorder %s4037_s8, %s4033_s7 }
   0x9   : > { %p55_p2 = scmp.eq.s32.totalorder %s4049_s11, 0  ;;  %p60_p3 = scmp.ne.s32.totalorder %s4033_s7, %s4029_s6 }
   0xa   : > { %s6857_s14 = smov (%p38_p0, %s36_s14), 0  ;;  %p61_p5 = scmp.eq.s32.totalorder %s3837_s12, 0 }
   0xb   : > { %p4125_p4 = por %p55_p2, %p54_p1  ;;  %s40_s17 = ssub.s32 %s4045_s10, %s6857_s14 }
   0xc   : > { %p88_p6 = scmp.eq.s32.totalorder %s3837_s12, 1  ;;  %p45_p7 = scmp.eq.s32.totalorder %s40_s17, 0 }
   0xd   : > { %p4131_p8 = por %p61_p5, %p60_p3  ;;  %p94_p10 = scmp.eq.s32.totalorder %s3838_s13, 1 }
   0xe   : > { %p4135_p9 = por %p88_p6, %p54_p1  ;;  %p3866_p13 = scmp.lt.s32.totalorder %s4049_s11, 2 }
   0xf   : > { %s4140_s20 = scalar_select %p45_p7, %s4037_s8, %s47_s15  }
  0x10   : > { %s6558_s19 = scalar_select %p4135_p9, 1, 0 }
  0x11   : > { %p4142_p11 = por %p94_p10, %p60_p3  ;;  %s114_s22 = sand.u32 1, %s4037_s8  }
  0x12   : > { %s3841_s23 = sshll.u32 %s114_s22, 6  ;;  %s3852_s24 = sshll.u32 %s4045_s10, 10 }
  0x13   : > { %s6559_s21 = scalar_select %p4142_p11, 1, 0 }
  0x14   : > { %s4153_s27 = scalar_lea.hbm %s6449_s0, %s3852_s24  ;;  %s118_s28 = scalar_lea.vmem [#allocation2], %s3841_s23 }
  0x15   : > { %s130_s29 = sshll.u32 %s118_s28, 4  ;;  %p4159_p0 = pnand %p3866_p13, %p4125_p4  ;;  %s4155_s29 = int_to_ptr.vmem [resolvable:$true] %s130_s29 }
  0x16   : > { %s4164_s2 = scalar_lea.sflag [#allocation3], %s114_s22  ;;  %s3937_s3 = scalar_lea.hbm %s4153_s27, 1024 }
  0x17   : > { %p3938_p2 = scmp.ne.s32.totalorder %s4153_s27, %s3937_s3  ;;  %p3939_p3 = pneg %p4159_p0 }
  0x18   : > { %s3942_s12 = scalar_lea.hbm %s6449_s0, 2048  ;;  %p3943_p4 = scmp.lt.u32.totalorder %s4153_s27, %s6449_s0 }
  0x19   : > { %p3940_p5 = pnand %p3939_p3, %p3938_p2  ;;  %p3944_p7 = scmp.lt.u32.totalorder %s3942_s12, %s3937_s3 }
  0x1a   : > { %p3946_p13 = scmp.lt.u32.totalorder %s3937_s3, %s4153_s27 }
  0x1b   : > { %p3941_p6 = pneg %p3940_p5  ;;  %p3945_p10 = por %p3944_p7, %p3943_p4 }
  0x1d   : > { %p3947_p12 = por %p3946_p13, %p3945_p10 }
  0x1f   : > { %p3948_p1 = pnand %p3947_p12, %p3941_p6 }
  0x21   : > { %3951 = shalt.err (!%p3948_p1)
}
  0x22   : > { %s3952_s16 = scalar_lea.vmem %s4155_s29, 1024  ;;  %s4051_s17 = smov [#allocation2]  }
  0x23   : > { %p3953_p2 = scmp.ne.s32.totalorder %s4155_s29, %s3952_s16  ;;  %s3957_s22 = sshll.u32 %s4051_s17, 4  ;;  %s3958_s22 = int_to_ptr.vmem [resolvable:$false] %s3957_s22 }
  0x24   : > { %s3959_s23 = scalar_lea.vmem %s3958_s22, 2048  ;;  %p3960_p9 = scmp.lt.s32.totalorder %s4155_s29, %s3958_s22 }
  0x25   : > { %p3955_p5 = pnand %p3953_p2, %p3939_p3  ;;  %p3961_p4 = scmp.lt.s32.totalorder %s3959_s23, %s3952_s16 }
  0x27   : > { %p3956_p11 = pneg %p3955_p5  ;;  %p3962_p7 = por %p3961_p4, %p3960_p9 }
  0x29   : > { %p3963_p10 = pnand %p3962_p7, %p3956_p11 }
  0x2b   : > { %3966 = shalt.err (!%p3963_p10)
}
  0x2c   : > { %s4052_s24 = smov 128   ;;  %s4053_s25 = smov 8  }
  0x2d   : > { %3861 = dma.hbm_to_vmem [thread:$0]  (!%p4159_p0), %s4153_s27, 1024, %s4155_s29, %s4164_s2, %s4052_s24, %s4052_s24, %s4053_s25  }
  0x2e   : > { %p138_p12 = scmp.lt.s32.totalorder %s4049_s11, 3  ;;  %p6561_p1 = scmp.ge.s32.totalorder %s4049_s11, 1 }
  0x30   : > { %p139_p3 = pnand %p6561_p1, %p138_p12 }
  0x32   : > { %142 = sbr.rel (%p139_p3) target bundleno = 916 (0x394), region = 24 }
  0x39   : > { %s4196_s26 = sand.u32 1, %s4033_s7  }
  0x3a   : > { %s3845_s28 = sshll.u32 %s4196_s26, 6  ;;  %s145_s3 = scalar_lea.sflag [#allocation3], %s4196_s26 }
  0x3b   : > { %s4202_s4 = scalar_lea.vmem [#allocation2], %s3845_s28 }
  0x3c   : > { %4020 = dma.done.wait (%p4131_p8), %s145_s3, 1024  }
  0x3d   : > { %4022 = vsyncadd (%p4131_p8), %s145_s3, 4294966272  ;;  %v179_v0 = vlaneseq  ;;  %v171_v4 = vld [vmem:[%s4202_s4] sm:$0xff]  ;;  %v172_v19 = vld [vmem:[%s4202_s4 + $0x8] sm:$0xff]  ;;  %v4054_v47 = vmov 1983009808   ;;  %s4056_s18 = smov 2  }
  0x3e   : > { %v173_v28 = vld [vmem:[%s4202_s4 + $0x10] sm:$0xff]  ;;  %v174_v37 = vld [vmem:[%s4202_s4 + $0x18] sm:$0xff]  ;;  %v886_v48 = vunpack.c.l.s4 %v4054_v47  ;;  %v175_v52 = vld [vmem:[%s4202_s4 + $0x20] sm:$0xff]  ;;  %s4057_s27 = smov 4   ;;  %s4058_s29 = smov 6   ;;  %vm3539_vm0 = vcmask 15360  }
  0x3f   : > { %v4208_v1 = vshrl.u32 %v179_v0, 7  ;;  %s4059_s30 = smov 8   ;;  %s4060_s2 = smov 10   ;;  %vm3548_vm1 = vcmask 31744   ;;  %vm3557_vm2 = vcmask 48128   ;;  %vm3566_vm3 = vcmask 64512  }
  0x40   : > { %v887_v53 = vunpack.c.0.s8 %v886_v48  ;;  %v176_v48 = vld [vmem:[%s4202_s4 + $0x28] sm:$0xff]  ;;  %s4061_s5 = smov 12   ;;  %s4062_s12 = smov 14   ;;  %vm3575_vm4 = vcmask 80896   ;;  %vm3584_vm5 = vcmask 97280   ;;  %vm3593_vm6 = vcmask 113664  }
  0x41   : > { %v4211_v2 = vsub.s32 1, %v4208_v1  ;;  %v4214_v3 = vsub.s32 0, %v4208_v1  ;;  %v4220_v7 = vsub.s32 2, %v4208_v1  ;;  %v4224_v9 = vsub.s32 3, %v4208_v1  ;;  %s4063_s13 = smov 16   ;;  %s4064_s15 = smov 18  }
  0x42   : > { %v4228_v11 = vsub.s32 4, %v4208_v1  ;;  %v4232_v13 = vsub.s32 5, %v4208_v1  ;;  %v4236_v15 = vsub.s32 6, %v4208_v1  ;;  %v4240_v17 = vsub.s32 7, %v4208_v1  ;;  %s4065_s16 = smov 20   ;;  %s4066_s17 = smov 22  }
  0x43   : > { %v193_v5 = vrot.slane %v171_v4, %v4211_v2  ;;  %v182_v6 = vrot.slane %v171_v4, %v4214_v3  ;;  %v204_v8 = vrot.slane %v171_v4, %v4220_v7  ;;  %v215_v10 = vrot.slane %v171_v4, %v4224_v9  ;;  %s4067_s22 = smov 24   ;;  %s4068_s23 = smov 26  }
  0x44   : > { %v226_v12 = vrot.slane %v171_v4, %v4228_v11  ;;  %v237_v14 = vrot.slane %v171_v4, %v4232_v13  ;;  %v248_v16 = vrot.slane %v171_v4, %v4236_v15  ;;  %v259_v18 = vrot.slane %v171_v4, %v4240_v17  ;;  %s4069_s24 = smov 28   ;;  %s4070_s25 = smov 30  }
  0x45   : > { %195 = vbcast.lane.b32.xlu1 %v193_v5, 256  ;;  %184 = vbcast.lane.b32.xlu0 %v182_v6, 256  ;;  %v270_v20 = vrot.slane %v172_v19, %v4214_v3  ;;  %v281_v21 = vrot.slane %v172_v19, %v4211_v2  ;;  %v292_v22 = vrot.slane %v172_v19, %v4220_v7  ;;  %vm3602_vm7 = vcmask 130048   ;;  %s6304_s3 = scalar_lea.vmem [#allocation5], %s3845_s28  ;;  %s3853_s28 = sshll.u32 %s4041_s9, 10 }
  0x46   : > { %v303_v23 = vrot.slane %v172_v19, %v4224_v9  ;;  %v314_v24 = vrot.slane %v172_v19, %v4228_v11  ;;  %v325_v25 = vrot.slane %v172_v19, %v4232_v13  ;;  %v336_v26 = vrot.slane %v172_v19, %v4236_v15  ;;  %p6848_p9 = scmp.ne.s32.totalorder %s6558_s19, 0  ;;  %s4072_s9 = smov [#allocation5]  }
  0x47   : > { %v347_v27 = vrot.slane %v172_v19, %v4240_v17  ;;  %v358_v29 = vrot.slane %v173_v28, %v4214_v3  ;;  %v369_v30 = vrot.slane %v173_v28, %v4211_v2  ;;  %v380_v31 = vrot.slane %v173_v28, %v4220_v7 }
  0x48   : > { %v391_v32 = vrot.slane %v173_v28, %v4224_v9  ;;  %v402_v33 = vrot.slane %v173_v28, %v4228_v11  ;;  %v413_v34 = vrot.slane %v173_v28, %v4232_v13  ;;  %v424_v35 = vrot.slane %v173_v28, %v4236_v15 }
  0x49   : > { %199 = vbcast.lane.b32.xlu1 %v193_v5, 264  ;;  %188 = vbcast.lane.b32.xlu0 %v182_v6, 264  ;;  %v435_v36 = vrot.slane %v173_v28, %v4240_v17  ;;  %v446_v38 = vrot.slane %v174_v37, %v4214_v3  ;;  %v457_v39 = vrot.slane %v174_v37, %v4211_v2  ;;  %vm3611_vm8 = vcmask 146432  }
  0x4a   : > { %v468_v40 = vrot.slane %v174_v37, %v4220_v7  ;;  %v479_v41 = vrot.slane %v174_v37, %v4224_v9  ;;  %v490_v42 = vrot.slane %v174_v37, %v4228_v11  ;;  %v501_v43 = vrot.slane %v174_v37, %v4232_v13 }
  0x4b   : > { %v512_v46 = vrot.slane %v174_v37, %v4236_v15  ;;  %v523_v51 = vrot.slane %v174_v37, %v4240_v17  ;;  %v534_v56 = vrot.slane %v175_v52, %v4214_v3  ;;  %v4285_v57 = vsub.s32 %v887_v53, %v4208_v1 }
  0x4c   : > { %v545_v62 = vrot.slane %v175_v52, %v4211_v2  ;;  %vm3620_vm9 = vcmask 162816   ;;  %vm3629_vm10 = vcmask 179200   ;;  %vm3638_vm11 = vcmask 195584  }
  0x4d   : > { %210 = vbcast.lane.b32.xlu1 %v204_v8, 264  ;;  %206 = vbcast.lane.b32.xlu0 %v204_v8, 256  ;;  %v556_v8 = vrot.slane %v175_v52, %v4220_v7  ;;  %vm3647_vm12 = vcmask 211968   ;;  %vm3656_vm13 = vcmask 228352   ;;  %vm3665_vm14 = vcmask 244736  }
  0x4e   : > { %vm3674_vm15 = vcmask 261120  }
  0x51   : > { %221 = vbcast.lane.b32.xlu1 %v215_v10, 264  ;;  %217 = vbcast.lane.b32.xlu0 %v215_v10, 256 }
  0x55   : > { %232 = vbcast.lane.b32.xlu1 %v226_v12, 264  ;;  %228 = vbcast.lane.b32.xlu0 %v226_v12, 256 }
  0x59   : > { %243 = vbcast.lane.b32.xlu1 %v237_v14, 264  ;;  %239 = vbcast.lane.b32.xlu0 %v237_v14, 256  ;;  %v567_v14 = vrot.slane %v175_v52, %v4224_v9 }
  0x5d   : > { %254 = vbcast.lane.b32.xlu1 %v248_v16, 264  ;;  %250 = vbcast.lane.b32.xlu0 %v248_v16, 256  ;;  %v4055_v16 = vmov 1934713408  }
  0x61   : > { %265 = vbcast.lane.b32.xlu1 %v259_v18, 264  ;;  %261 = vbcast.lane.b32.xlu0 %v259_v18, 256  ;;  %v950_v18 = vunpack.c.l.s4 %v4055_v16  ;;  %v644_v16 = vrot.slane %v176_v48, %v4220_v7 }
  0x65   : > { %276 = vbcast.lane.b32.xlu1 %v270_v20, 264  ;;  %272 = vbcast.lane.b32.xlu0 %v270_v20, 256 }
  0x69   : > { %287 = vbcast.lane.b32.xlu1 %v281_v21, 264  ;;  %283 = vbcast.lane.b32.xlu0 %v281_v21, 256  ;;  %v578_v21 = vrot.slane %v175_v52, %v4228_v11 }
  0x6d   : > { %298 = vbcast.lane.b32.xlu1 %v292_v22, 264  ;;  %294 = vbcast.lane.b32.xlu0 %v292_v22, 256  ;;  %v951_v22 = vunpack.c.0.s8 %v950_v18 }
  0x71   : > { %309 = vbcast.lane.b32.xlu1 %v303_v23, 264  ;;  %305 = vbcast.lane.b32.xlu0 %v303_v23, 256 }
  0x75   : > { %320 = vbcast.lane.b32.xlu1 %v314_v24, 264  ;;  %316 = vbcast.lane.b32.xlu0 %v314_v24, 256 }
  0x79   : > { %331 = vbcast.lane.b32.xlu1 %v325_v25, 264  ;;  %327 = vbcast.lane.b32.xlu0 %v325_v25, 256 }
  0x7d   : > { %342 = vbcast.lane.b32.xlu1 %v336_v26, 264  ;;  %338 = vbcast.lane.b32.xlu0 %v336_v26, 256 }
  0x81   : > { %353 = vbcast.lane.b32.xlu1 %v347_v27, 264  ;;  %349 = vbcast.lane.b32.xlu0 %v347_v27, 256  ;;  %v589_v27 = vrot.slane %v175_v52, %v4232_v13 }
  0x85   : > { %364 = vbcast.lane.b32.xlu1 %v358_v29, 264  ;;  %360 = vbcast.lane.b32.xlu0 %v358_v29, 256  ;;  %v4324_v29 = vsub.s32 %v951_v22, %v4208_v1  ;;  %v655_v22 = vrot.slane %v176_v48, %v4224_v9 }
  0x89   : > { %375 = vbcast.lane.b32.xlu1 %v369_v30, 264  ;;  %371 = vbcast.lane.b32.xlu0 %v369_v30, 256 }
  0x8d   : > { %386 = vbcast.lane.b32.xlu1 %v380_v31, 264  ;;  %382 = vbcast.lane.b32.xlu0 %v380_v31, 256 }
  0x91   : > { %397 = vbcast.lane.b32.xlu1 %v391_v32, 264  ;;  %393 = vbcast.lane.b32.xlu0 %v391_v32, 256 }
  0x95   : > { %408 = vbcast.lane.b32.xlu1 %v402_v33, 264  ;;  %404 = vbcast.lane.b32.xlu0 %v402_v33, 256 }
  0x99   : > { %419 = vbcast.lane.b32.xlu1 %v413_v34, 264  ;;  %415 = vbcast.lane.b32.xlu0 %v413_v34, 256 }
  0x9d   : > { %430 = vbcast.lane.b32.xlu1 %v424_v35, 264  ;;  %426 = vbcast.lane.b32.xlu0 %v424_v35, 256 }
  0xa1   : > { %441 = vbcast.lane.b32.xlu1 %v435_v36, 264  ;;  %437 = vbcast.lane.b32.xlu0 %v435_v36, 256  ;;  %v600_v36 = vrot.slane %v175_v52, %v4236_v15 }
  0xa5   : > { %452 = vbcast.lane.b32.xlu1 %v446_v38, 264  ;;  %448 = vbcast.lane.b32.xlu0 %v446_v38, 256 }
  0xa9   : > { %463 = vbcast.lane.b32.xlu1 %v457_v39, 264  ;;  %459 = vbcast.lane.b32.xlu0 %v457_v39, 256 }
  0xad   : > { %474 = vbcast.lane.b32.xlu1 %v468_v40, 264  ;;  %470 = vbcast.lane.b32.xlu0 %v468_v40, 256 }
  0xb1   : > { %485 = vbcast.lane.b32.xlu1 %v479_v41, 264  ;;  %481 = vbcast.lane.b32.xlu0 %v479_v41, 256 }
  0xb5   : > { %496 = vbcast.lane.b32.xlu1 %v490_v42, 264  ;;  %492 = vbcast.lane.b32.xlu0 %v490_v42, 256  ;;  %v611_v42 = vrot.slane %v175_v52, %v4240_v17 }
  0xb7   : > { %v4268_v44 = vpop.permute.xlu1 %195  ;;  %v4270_v45 = vpop.permute.xlu0 %184 }
  0xb9   : > { %507 = vbcast.lane.b32.xlu1 %v501_v43, 264  ;;  %503 = vbcast.lane.b32.xlu0 %v501_v43, 256 }
  0xbb   : > { %v4273_v49 = vpop.permute.xlu1 %199  ;;  %v4275_v50 = vpop.permute.xlu0 %188 }
  0xbc   : > { %6562 = vst [vmem:[#allocation8_spill] sm:$0xff] %v4273_v49  ;;  %6563 = vst [vmem:[#allocation9_spill] sm:$0xff] %v4275_v50 }
  0xbd   : > { %518 = vbcast.lane.b32.xlu1 %v512_v46, 264  ;;  %514 = vbcast.lane.b32.xlu0 %v512_v46, 256 }
  0xbf   : > { %v4279_v54 = vpop.permute.xlu1 %210  ;;  %v4281_v55 = vpop.permute.xlu0 %206 }
  0xc0   : > { %6564 = vst [vmem:[#allocation10_spill] sm:$0xff] %v4279_v54  ;;  %v883_v58 = vcombine.low %v4270_v45, %v4281_v55 }
  0xc1   : > { %529 = vbcast.lane.b32.xlu1 %v523_v51, 264  ;;  %525 = vbcast.lane.b32.xlu0 %v523_v51, 256 }
  0xc2   : > { %v891_v0 = vrot.slane %v883_v58, %v4285_v57 }
  0xc3   : > { %v4289_v59 = vpop.permute.xlu1 %221  ;;  %v4291_v60 = vpop.permute.xlu0 %217 }
  0xc4   : > { %6565 = vst [vmem:[#allocation11_spill] sm:$0xff] %v4289_v59  ;;  %v899_v61 = vcombine.low %v4268_v44, %v4291_v60 }
  0xc5   : > { %540 = vbcast.lane.b32.xlu1 %v534_v56, 264  ;;  %536 = vbcast.lane.b32.xlu0 %v534_v56, 256  ;;  %v622_v56 = vrot.slane %v176_v48, %v4214_v3 }
  0xc6   : > { %v907_v63 = vrot.slane %v899_v61, %v4285_v57 }
  0xc7   : > { %v4298_v4 = vpop.permute.xlu1 %232  ;;  %v4300_v5 = vpop.permute.xlu0 %228 }
  0xc8   : > { %6566 = vst [vmem:[#allocation12_spill] sm:$0xff] %v4298_v4  ;;  %v948_v6 = vcombine.high %v891_v0, %v907_v63  ;;  %v947_v30 = vcombine.low %v891_v0, %v907_v63  ;;  %v633_v63 = vrot.slane %v176_v48, %v4211_v2 }
  0xc9   : > { %551 = vbcast.lane.b32.xlu1 %v545_v62, 264  ;;  %547 = vbcast.lane.b32.xlu0 %v545_v62, 256 }
  0xca   : > { %v4337_v1 = vrot.slane %v947_v30, %v4324_v29  ;;  %v4343_v40 = vrot.slane %v948_v6, %v4324_v29 }
  0xcb   : > { %v4303_v10 = vpop.permute.xlu1 %243  ;;  %v4305_v12 = vpop.permute.xlu0 %239 }
  0xcc   : > { %6567 = vst [vmem:[#allocation13_spill] sm:$0xff] %v4303_v10  ;;  %6574 = vst [vmem:[#allocation20_spill] sm:$0xff] %v4337_v1 }
  0xcd   : > { %562 = vbcast.lane.b32.xlu1 %v556_v8, 264  ;;  %558 = vbcast.lane.b32.xlu0 %v556_v8, 256 }
  0xcf   : > { %v4308_v19 = vpop.permute.xlu1 %254  ;;  %v4310_v20 = vpop.permute.xlu0 %250 }
  0xd0   : > { %6568 = vst [vmem:[#allocation14_spill] sm:$0xff] %v4308_v19  ;;  %v915_v23 = vcombine.low %v4300_v5, %v4310_v20 }
  0xd1   : > { %573 = vbcast.lane.b32.xlu1 %v567_v14, 264  ;;  %569 = vbcast.lane.b32.xlu0 %v567_v14, 256 }
  0xd2   : > { %v923_v31 = vrot.slane %v915_v23, %v4285_v57 }
  0xd3   : > { %v4315_v24 = vpop.permute.xlu1 %265  ;;  %v4317_v25 = vpop.permute.xlu0 %261 }
  0xd4   : > { %6569 = vst [vmem:[#allocation15_spill] sm:$0xff] %v4315_v24  ;;  %v931_v26 = vcombine.low %v4305_v12, %v4317_v25 }
  0xd5   : > { %584 = vbcast.lane.b32.xlu1 %v578_v21, 264  ;;  %580 = vbcast.lane.b32.xlu0 %v578_v21, 256 }
  0xd6   : > { %v939_v28 = vrot.slane %v931_v26, %v4285_v57 }
  0xd7   : > { %v4327_v32 = vpop.permute.xlu1 %276  ;;  %v4329_v33 = vpop.permute.xlu0 %272 }
  0xd8   : > { %6570 = vst [vmem:[#allocation16_spill] sm:$0xff] %v4327_v32  ;;  %6571 = vst [vmem:[#allocation17_spill] sm:$0xff] %v4329_v33  ;;  %v979_v34 = vcombine.low %v923_v31, %v939_v28  ;;  %v980_v35 = vcombine.high %v923_v31, %v939_v28 }
  0xd9   : > { %595 = vbcast.lane.b32.xlu1 %v589_v27, 264  ;;  %591 = vbcast.lane.b32.xlu0 %v589_v27, 256  ;;  %v666_v27 = vrot.slane %v176_v48, %v4228_v11 }
  0xda   : > { %v4340_v39 = vrot.slane %v979_v34, %v4324_v29  ;;  %v4346_v41 = vrot.slane %v980_v35, %v4324_v29  ;;  %v677_v34 = vrot.slane %v176_v48, %v4232_v13 }
  0xdb   : > { %v4332_v37 = vpop.permute.xlu1 %287  ;;  %v4334_v38 = vpop.permute.xlu0 %283 }
  0xdc   : > { %6572 = vst [vmem:[#allocation18_spill] sm:$0xff] %v4332_v37  ;;  %6573 = vst [vmem:[#allocation19_spill] sm:$0xff] %v4334_v38 }
  0xdd   : > { %6575 = vst [vmem:[#allocation21_spill] sm:$0xff] %v4340_v39  ;;  %606 = vbcast.lane.b32.xlu1 %v600_v36, 264  ;;  %602 = vbcast.lane.b32.xlu0 %v600_v36, 256 }
  0xdf   : > { %v4356_v51 = vpop.permute.xlu1 %298  ;;  %v4358_v53 = vpop.permute.xlu0 %294 }
  0xe0   : > { %6576 = vst [vmem:[#allocation22_spill] sm:$0xff] %v4356_v51  ;;  %6577 = vst [vmem:[#allocation23_spill] sm:$0xff] %v4358_v53  ;;  %v1019_v52 = vcombine.low %v4329_v33, %v4358_v53 }
  0xe1   : > { %617 = vbcast.lane.b32.xlu1 %v611_v42, 264  ;;  %613 = vbcast.lane.b32.xlu0 %v611_v42, 256 }
  0xe2   : > { %v1027_v6 = vrot.slane %v1019_v52, %v4285_v57 }
  0xe3   : > { %v4363_v58 = vpop.permute.xlu0 %305  ;;  %v4365_v61 = vpop.permute.xlu1 %309 }
  0xe4   : > { %6578 = vst [vmem:[#allocation24_spill] sm:$0xff] %v4363_v58  ;;  %6579 = vst [vmem:[#allocation25_spill] sm:$0xff] %v4365_v61  ;;  %v1035_v62 = vcombine.low %v4334_v38, %v4363_v58 }
  0xe5   : > { %628 = vbcast.lane.b32.xlu1 %v622_v56, 264  ;;  %624 = vbcast.lane.b32.xlu0 %v622_v56, 256 }
  0xe6   : > { %v1043_v0 = vrot.slane %v1035_v62, %v4285_v57 }
  0xe7   : > { %v4372_v8 = vpop.permute.xlu0 %316  ;;  %v4375_v18 = vpop.permute.xlu1 %320 }
  0xe8   : > { %6580 = vst [vmem:[#allocation26_spill] sm:$0xff] %v4372_v8  ;;  %v1084_v14 = vcombine.high %v1027_v6, %v1043_v0  ;;  %6581 = vst [vmem:[#allocation27_spill] sm:$0xff] %v4375_v18  ;;  %v1083_v42 = vcombine.low %v1027_v6, %v1043_v0 }
  0xe9   : > { %639 = vbcast.lane.b32.xlu1 %v633_v63, 264  ;;  %635 = vbcast.lane.b32.xlu0 %v633_v63, 256 }
  0xea   : > { %v4402_v47 = vrot.slane %v1083_v42, %v4324_v29  ;;  %v4408_v0 = vrot.slane %v1084_v14, %v4324_v29  ;;  %v177_v14 = vld [vmem:[%s4202_s4 + $0x30] sm:$0xff] }
  0xeb   : > { %v4377_v21 = vpop.permute.xlu0 %327  ;;  %v4382_v26 = vpop.permute.xlu1 %331  ;;  %v765_v51 = vrot.slane %v177_v14, %v4232_v13 }
  0xec   : > { %6582 = vst [vmem:[#allocation28_spill] sm:$0xff] %v4377_v21  ;;  %6584 = vst [vmem:[#allocation30_spill] sm:$0xff] %v4382_v26 }
  0xed   : > { %650 = vbcast.lane.b32.xlu1 %v644_v16, 264  ;;  %646 = vbcast.lane.b32.xlu0 %v644_v16, 256  ;;  %v688_v16 = vrot.slane %v176_v48, %v4236_v15  ;;  %6586 = vst [vmem:[#allocation32_spill] sm:$0xff] %v4402_v47 }
  0xef   : > { %v4380_v23 = vpop.permute.xlu0 %338  ;;  %v4392_v35 = vpop.permute.xlu1 %342 }
  0xf0   : > { %6583 = vst [vmem:[#allocation29_spill] sm:$0xff] %v4380_v23  ;;  %v1051_v28 = vcombine.low %v4372_v8, %v4380_v23  ;;  %6585 = vst [vmem:[#allocation31_spill] sm:$0xff] %v4392_v35  ;;  %v743_v35 = vrot.slane %v177_v14, %v4224_v9 }
  0xf1   : > { %661 = vbcast.lane.b32.xlu1 %v655_v22, 264  ;;  %657 = vbcast.lane.b32.xlu0 %v655_v22, 256 }
  0xf2   : > { %v1059_v56 = vrot.slane %v1051_v28, %v4285_v57  ;;  %v699_v28 = vrot.slane %v176_v48, %v4240_v17 }
  0xf3   : > { %v4387_v30 = vpop.permute.xlu0 %349 }
  0xf4   : > { %v1067_v31 = vcombine.low %v4377_v21, %v4387_v30 }
  0xf5   : > { %672 = vbcast.lane.b32.xlu1 %v666_v27, 264  ;;  %668 = vbcast.lane.b32.xlu0 %v666_v27, 256  ;;  %v4413_v27 = vpop.permute.xlu1 %353 }
  0xf6   : > { %v1075_v36 = vrot.slane %v1067_v31, %v4285_v57  ;;  %6588 = vst [vmem:[#allocation34_spill] sm:$0xff] %v4413_v27  ;;  %v732_v27 = vrot.slane %v177_v14, %v4220_v7 }
  0xf7   : > { %v4396_v52 = vpop.permute.xlu0 %360 }
  0xf8   : > { %v1115_v62 = vcombine.low %v1059_v56, %v1075_v36  ;;  %v1116_v63 = vcombine.high %v1059_v56, %v1075_v36 }
  0xf9   : > { %683 = vbcast.lane.b32.xlu1 %v677_v34, 264  ;;  %679 = vbcast.lane.b32.xlu0 %v677_v34, 256 }
  0xfa   : > { %v4405_v31 = vrot.slane %v1115_v62, %v4324_v29  ;;  %v4411_v6 = vrot.slane %v1116_v63, %v4324_v29  ;;  %v710_v62 = vrot.slane %v177_v14, %v4214_v3  ;;  %v4426_v63 = vpop.permute.xlu1 %364 }
  0xfb   : > { %v4399_v22 = vpop.permute.xlu0 %371  ;;  %6589 = vst [vmem:[#allocation35_spill] sm:$0xff] %v4426_v63 }
  0xfc   : > { %6587 = vst [vmem:[#allocation33_spill] sm:$0xff] %v4405_v31 }
  0xfd   : > { %694 = vbcast.lane.b32.xlu1 %v688_v16, 264  ;;  %690 = vbcast.lane.b32.xlu0 %v688_v16, 256  ;;  %v721_v16 = vrot.slane %v177_v14, %v4211_v2 }
  0xfe   : > { %v4439_v26 = vpop.permute.xlu1 %375 }
  0xff   : > { %v4423_v56 = vpop.permute.xlu0 %382  ;;  %6590 = vst [vmem:[#allocation36_spill] sm:$0xff] %v4439_v26 }
 0x100   : > { %v1427_v48 = vcombine.low %v4396_v52, %v4423_v56 }
 0x101   : > { %705 = vbcast.lane.b32.xlu1 %v699_v28, 264  ;;  %701 = vbcast.lane.b32.xlu0 %v699_v28, 256 }
 0x102   : > { %v1435_v46 = vrot.slane %v1427_v48, %v4285_v57  ;;  %v4445_v37 = vpop.permute.xlu1 %386 }
 0x103   : > { %v4430_v34 = vpop.permute.xlu0 %393  ;;  %6591 = vst [vmem:[#allocation37_spill] sm:$0xff] %v4445_v37 }
 0x104   : > { %v1443_v36 = vcombine.low %v4399_v22, %v4430_v34 }
 0x105   : > { %716 = vbcast.lane.b32.xlu1 %v710_v62, 264  ;;  %712 = vbcast.lane.b32.xlu0 %v710_v62, 256  ;;  %v754_v62 = vrot.slane %v177_v14, %v4228_v11 }
 0x106   : > { %v1451_v42 = vrot.slane %v1443_v36, %v4285_v57 }
 0x107   : > { %v4437_v43 = vpop.permute.xlu0 %404 }
 0x108   : > { %v1492_v28 = vcombine.high %v1435_v46, %v1451_v42  ;;  %v1491_v26 = vcombine.low %v1435_v46, %v1451_v42 }
 0x109   : > { %727 = vbcast.lane.b32.xlu1 %v721_v16, 264  ;;  %723 = vbcast.lane.b32.xlu0 %v721_v16, 256  ;;  %v4454_v16 = vpop.permute.xlu1 %397 }
 0x10a   : > { %6592 = vst [vmem:[#allocation38_spill] sm:$0xff] %v4454_v16  ;;  %v776_v16 = vrot.slane %v177_v14, %v4236_v15  ;;  %v4469_v24 = vrot.slane %v1491_v26, %v4324_v29  ;;  %v4475_v46 = vrot.slane %v1492_v28, %v4324_v29 }
 0x10b   : > { %v4442_v18 = vpop.permute.xlu0 %415 }
 0x10c   : > { %6596 = vst [vmem:[#allocation42_spill] sm:$0xff] %v4469_v24 }
 0x10d   : > { %738 = vbcast.lane.b32.xlu1 %v732_v27, 264  ;;  %734 = vbcast.lane.b32.xlu0 %v732_v27, 256  ;;  %v4464_v54 = vpop.permute.xlu1 %408 }
 0x10e   : > { %6594 = vst [vmem:[#allocation40_spill] sm:$0xff] %v4464_v54 }
 0x10f   : > { %v4447_v36 = vpop.permute.xlu0 %426 }
 0x110   : > { %v1459_v48 = vcombine.low %v4437_v43, %v4447_v36 }
 0x111   : > { %749 = vbcast.lane.b32.xlu1 %v743_v35, 264  ;;  %745 = vbcast.lane.b32.xlu0 %v743_v35, 256  ;;  %v4490_v28 = vpop.permute.xlu1 %419 }
 0x112   : > { %v1467_v63 = vrot.slane %v1459_v48, %v4285_v57  ;;  %6599 = vst [vmem:[#allocation45_spill] sm:$0xff] %v4490_v28 }
 0x113   : > { %v4452_v61 = vpop.permute.xlu0 %437 }
 0x114   : > { %v1475_v32 = vcombine.low %v4442_v18, %v4452_v61 }
 0x115   : > { %760 = vbcast.lane.b32.xlu1 %v754_v62, 264  ;;  %756 = vbcast.lane.b32.xlu0 %v754_v62, 256  ;;  %v4500_v26 = vpop.permute.xlu1 %430 }
 0x116   : > { %v1483_v27 = vrot.slane %v1475_v32, %v4285_v57  ;;  %6601 = vst [vmem:[#allocation47_spill] sm:$0xff] %v4500_v26 }
 0x117   : > { %v4461_v35 = vpop.permute.xlu0 %448 }
 0x118   : > { %6593 = vst [vmem:[#allocation39_spill] sm:$0xff] %v4461_v35  ;;  %v1523_v37 = vcombine.low %v1467_v63, %v1483_v27  ;;  %v1524_v50 = vcombine.high %v1467_v63, %v1483_v27  ;;  %v787_v63 = vrot.slane %v177_v14, %v4240_v17 }
 0x119   : > { %771 = vbcast.lane.b32.xlu1 %v765_v51, 264  ;;  %767 = vbcast.lane.b32.xlu0 %v765_v51, 256  ;;  %v4509_v19 = vpop.permute.xlu1 %441 }
 0x11a   : > { %v4472_v32 = vrot.slane %v1523_v37, %v4324_v29  ;;  %v4478_v42 = vrot.slane %v1524_v50, %v4324_v29  ;;  %v178_v37 = vld [vmem:[%s4202_s4 + $0x38] sm:$0xff]  ;;  %6604 = vst [vmem:[#allocation50_spill] sm:$0xff] %v4509_v19  ;;  %s4071_s4 = smov 32  }
 0x11b   : > { %v4466_v10 = vpop.permute.xlu0 %459  ;;  %v798_v50 = vrot.slane %v178_v37, %v4214_v3  ;;  %v820_v54 = vrot.slane %v178_v37, %v4220_v7 }
 0x11c   : > { %6595 = vst [vmem:[#allocation41_spill] sm:$0xff] %v4466_v10  ;;  %6597 = vst [vmem:[#allocation43_spill] sm:$0xff] %v4472_v32 }
 0x11d   : > { %782 = vbcast.lane.b32.xlu1 %v776_v16, 264  ;;  %778 = vbcast.lane.b32.xlu0 %v776_v16, 256  ;;  %v809_v16 = vrot.slane %v178_v37, %v4211_v2  ;;  %v831_v2 = vrot.slane %v178_v37, %v4224_v9  ;;  %v853_v9 = vrot.slane %v178_v37, %v4232_v13 }
 0x11f   : > { %v4488_v48 = vpop.permute.xlu0 %470 }
 0x120   : > { %6598 = vst [vmem:[#allocation44_spill] sm:$0xff] %v4488_v48  ;;  %v1563_v14 = vcombine.low %v4461_v35, %v4488_v48  ;;  %v864_v35 = vrot.slane %v178_v37, %v4236_v15 }
 0x121   : > { %793 = vbcast.lane.b32.xlu1 %v787_v63, 264  ;;  %789 = vbcast.lane.b32.xlu0 %v787_v63, 256 }
 0x122   : > { %v1571_v28 = vrot.slane %v1563_v14, %v4285_v57 }
 0x123   : > { %v4495_v27 = vpop.permute.xlu0 %481 }
 0x124   : > { %6600 = vst [vmem:[#allocation46_spill] sm:$0xff] %v4495_v27  ;;  %v1579_v62 = vcombine.low %v4466_v10, %v4495_v27 }
 0x125   : > { %804 = vbcast.lane.b32.xlu1 %v798_v50, 264  ;;  %800 = vbcast.lane.b32.xlu0 %v798_v50, 256  ;;  %v4515_v50 = vpop.permute.xlu1 %452 }
 0x126   : > { %v1587_v51 = vrot.slane %v1579_v62, %v4285_v57  ;;  %v842_v62 = vrot.slane %v178_v37, %v4228_v11  ;;  %6606 = vst [vmem:[#allocation52_spill] sm:$0xff] %v4515_v50 }
 0x127   : > { %v4504_v3 = vpop.permute.xlu0 %492 }
 0x128   : > { %6602 = vst [vmem:[#allocation48_spill] sm:$0xff] %v4504_v3  ;;  %v1628_v63 = vcombine.high %v1571_v28, %v1587_v51  ;;  %v1627_v19 = vcombine.low %v1571_v28, %v1587_v51 }
 0x129   : > { %815 = vbcast.lane.b32.xlu1 %v809_v16, 264  ;;  %811 = vbcast.lane.b32.xlu0 %v809_v16, 256 }
 0x12a   : > { %v4532_v48 = vrot.slane %v1627_v19, %v4324_v29  ;;  %v4538_v51 = vrot.slane %v1628_v63, %v4324_v29  ;;  %v1556_v19 = vcombine.high %v4469_v24, %v4472_v32 }
 0x12b   : > { %v4507_v4 = vpop.permute.xlu0 %503 }
 0x12c   : > { %6603 = vst [vmem:[#allocation49_spill] sm:$0xff] %v4507_v4  ;;  %6609 = vst [vmem:[#allocation55_spill] sm:$0xff] %v4532_v48 }
 0x12d   : > { %826 = vbcast.lane.b32.xlu1 %v820_v54, 264  ;;  %822 = vbcast.lane.b32.xlu0 %v820_v54, 256 }
 0x12f   : > { %v4512_v26 = vpop.permute.xlu0 %514 }
 0x130   : > { %6605 = vst [vmem:[#allocation51_spill] sm:$0xff] %v4512_v26  ;;  %v1595_v7 = vcombine.low %v4504_v3, %v4512_v26 }
 0x131   : > { %837 = vbcast.lane.b32.xlu1 %v831_v2, 264  ;;  %833 = vbcast.lane.b32.xlu0 %v831_v2, 256  ;;  %v4528_v2 = vpop.permute.xlu1 %463 }
 0x132   : > { %v1603_v11 = vrot.slane %v1595_v7, %v4285_v57  ;;  %6608 = vst [vmem:[#allocation54_spill] sm:$0xff] %v4528_v2  ;;  %v875_v7 = vrot.slane %v178_v37, %v4240_v17  ;;  %v1148_v17 = vcombine.high %v4402_v47, %v4405_v31 }
 0x133   : > { %v4519_v14 = vpop.permute.xlu0 %525 }
 0x134   : > { %6607 = vst [vmem:[#allocation53_spill] sm:$0xff] %v4519_v14  ;;  %v1611_v16 = vcombine.low %v4507_v4, %v4519_v14 }
 0x135   : > { %848 = vbcast.lane.b32.xlu1 %v842_v62, 264  ;;  %844 = vbcast.lane.b32.xlu0 %v842_v62, 256 }
 0x136   : > { %v1619_v54 = vrot.slane %v1611_v16, %v4285_v57  ;;  %v4552_v16 = vpop.permute.xlu1 %474 }
 0x137   : > { %v4526_v49 = vpop.permute.xlu0 %536  ;;  %6611 = vst [vmem:[#allocation57_spill] sm:$0xff] %v4552_v16 }
 0x138   : > { %v1659_v50 = vcombine.low %v1603_v11, %v1619_v54  ;;  %v1660_v59 = vcombine.high %v1603_v11, %v1619_v54  ;;  %v1012_v54 = vcombine.high %v4337_v1, %v4340_v39 }
 0x139   : > { %859 = vbcast.lane.b32.xlu1 %v853_v9, 264  ;;  %855 = vbcast.lane.b32.xlu0 %v853_v9, 256 }
 0x13a   : > { %v4535_v13 = vrot.slane %v1659_v50, %v4324_v29  ;;  %v4541_v28 = vrot.slane %v1660_v59, %v4324_v29  ;;  %v4560_v37 = vpop.permute.xlu1 %485 }
 0x13b   : > { %v4543_v62 = vpop.permute.xlu0 %547  ;;  %6612 = vst [vmem:[#allocation58_spill] sm:$0xff] %v4560_v37 }
 0x13c   : > { %6610 = vst [vmem:[#allocation56_spill] sm:$0xff] %v4535_v13  ;;  %v1692_v15 = vcombine.high %v4532_v48, %v4535_v13 }
 0x13d   : > { %870 = vbcast.lane.b32.xlu1 %v864_v35, 264  ;;  %866 = vbcast.lane.b32.xlu0 %v864_v35, 256 }
 0x13e   : > { %v4579_v47 = vpop.permute.xlu1 %496 }
 0x13f   : > { %v4554_v63 = vpop.permute.xlu0 %558  ;;  %6613 = vst [vmem:[#allocation59_spill] sm:$0xff] %v4579_v47 }
 0x140   : > { %v1971_v59 = vcombine.low %v4526_v49, %v4554_v63 }
 0x141   : > { %881 = vbcast.lane.b32.xlu1 %v875_v7, 264  ;;  %877 = vbcast.lane.b32.xlu0 %v875_v7, 256 }
 0x142   : > { %v1979_v11 = vrot.slane %v1971_v59, %v4285_v57  ;;  %v4584_v59 = vpop.permute.xlu1 %507 }
 0x143   : > { %v4562_v9 = vpop.permute.xlu0 %569  ;;  %6614 = vst [vmem:[#allocation60_spill] sm:$0xff] %v4584_v59 }
 0x144   : > { %v1987_v35 = vcombine.low %v4543_v62, %v4562_v9 }
 0x145   : > { %3069 = vrot.lane.b32.xlu1 %v1148_v17, %s4056_s18  ;;  %3067 = vrot.lane.b32.xlu0 %v1012_v54, %s4056_s18 }
 0x146   : > { %v1995_v7 = vrot.slane %v1987_v35, %v4285_v57  ;;  %v4594_v32 = vpop.permute.xlu1 %518 }
 0x147   : > { %v4574_v50 = vpop.permute.xlu0 %580  ;;  %6615 = vst [vmem:[#allocation61_spill] sm:$0xff] %v4594_v32 }
 0x148   : > { %v2036_v31 = vcombine.high %v1979_v11, %v1995_v7 }
 0x149   : > { %3073 = vrot.lane.b32.xlu1 %v1692_v15, %s4056_s18  ;;  %3071 = vrot.lane.b32.xlu0 %v1556_v19, %s4056_s18  ;;  %v2035_v15 = vcombine.low %v1979_v11, %v1995_v7 }
 0x14a   : > { %v4607_v37 = vrot.slane %v2036_v31, %v4324_v29  ;;  %v4612_v11 = vpop.permute.xlu1 %529 }
 0x14b   : > { %v4582_v17 = vpop.permute.xlu0 %591  ;;  %v4601_v47 = vrot.slane %v2035_v15, %v4324_v29  ;;  %6619 = vst [vmem:[#allocation65_spill] sm:$0xff] %v4612_v11 }
 0x14d   : > { %6617 = vst [vmem:[#allocation63_spill] sm:$0xff] %v4601_v47 }
 0x14f   : > { %v4586_v54 = vpop.permute.xlu0 %602 }
 0x150   : > { %v2003_v35 = vcombine.low %v4574_v50, %v4586_v54 }
 0x152   : > { %v2011_v24 = vrot.slane %v2003_v35, %v4285_v57  ;;  %v4627_v35 = vpop.permute.xlu1 %540 }
 0x153   : > { %v4590_v13 = vpop.permute.xlu0 %613  ;;  %6622 = vst [vmem:[#allocation68_spill] sm:$0xff] %v4627_v35 }
 0x154   : > { %v2019_v48 = vcombine.low %v4582_v17, %v4590_v13 }
 0x156   : > { %v2027_v19 = vrot.slane %v2019_v48, %v4285_v57  ;;  %v4637_v16 = vpop.permute.xlu1 %551 }
 0x157   : > { %v4598_v39 = vpop.permute.xlu0 %624  ;;  %6624 = vst [vmem:[#allocation70_spill] sm:$0xff] %v4637_v16 }
 0x158   : > { %6616 = vst [vmem:[#allocation62_spill] sm:$0xff] %v4598_v39  ;;  %v2067_v1 = vcombine.low %v2011_v24, %v2027_v19  ;;  %v2068_v59 = vcombine.high %v2011_v24, %v2027_v19 }
 0x15a   : > { %v4604_v2 = vrot.slane %v2067_v1, %v4324_v29  ;;  %v4610_v32 = vrot.slane %v2068_v59, %v4324_v29 }
 0x15b   : > { %v4614_v7 = vpop.permute.xlu0 %635 }
 0x15c   : > { %6618 = vst [vmem:[#allocation64_spill] sm:$0xff] %v4604_v2  ;;  %6620 = vst [vmem:[#allocation66_spill] sm:$0xff] %v4614_v7  ;;  %v2100_v48 = vcombine.high %v4601_v47, %v4604_v2  ;;  %v4643_v47 = vpop.permute.xlu1 %562 }
 0x15d   : > { %6627 = vst [vmem:[#allocation73_spill] sm:$0xff] %v4643_v47 }
 0x15e   : > { %3075 = vrot.lane.b32.xlu0 %v2100_v48, %s4056_s18 }
 0x15f   : > { %v4625_v59 = vpop.permute.xlu0 %646 }
 0x160   : > { %6621 = vst [vmem:[#allocation67_spill] sm:$0xff] %v4625_v59  ;;  %v2107_v15 = vcombine.low %v4598_v39, %v4625_v59  ;;  %v4649_v59 = vpop.permute.xlu1 %573 }
 0x161   : > { %6629 = vst [vmem:[#allocation75_spill] sm:$0xff] %v4649_v59 }
 0x162   : > { %v2115_v11 = vrot.slane %v2107_v15, %v4285_v57 }
 0x163   : > { %v4631_v19 = vpop.permute.xlu0 %657 }
 0x164   : > { %6623 = vst [vmem:[#allocation69_spill] sm:$0xff] %v4631_v19  ;;  %v2123_v24 = vcombine.low %v4614_v7, %v4631_v19  ;;  %v4659_v10 = vpop.permute.xlu1 %584 }
 0x165   : > { %6631 = vst [vmem:[#allocation77_spill] sm:$0xff] %v4659_v10 }
 0x166   : > { %v2131_v1 = vrot.slane %v2123_v24, %v4285_v57 }
 0x167   : > { %v4639_v31 = vpop.permute.xlu0 %668 }
 0x168   : > { %6625 = vst [vmem:[#allocation71_spill] sm:$0xff] %v4639_v31  ;;  %v2172_v48 = vcombine.high %v2115_v11, %v2131_v1  ;;  %v2171_v15 = vcombine.low %v2115_v11, %v2131_v1 }
 0x16b   : > { %v4641_v2 = vpop.permute.xlu0 %679 }
 0x16c   : > { %6626 = vst [vmem:[#allocation72_spill] sm:$0xff] %v4641_v2 }
 0x16f   : > { %v4645_v35 = vpop.permute.xlu0 %690 }
 0x170   : > { %6628 = vst [vmem:[#allocation74_spill] sm:$0xff] %v4645_v35  ;;  %v2139_v39 = vcombine.low %v4639_v31, %v4645_v35  ;;  %v4662_v31 = vrot.slane %v2171_v15, %v4324_v29  ;;  %v4668_v35 = vrot.slane %v2172_v48, %v4324_v29  ;;  %v4684_v48 = vpop.permute.xlu1 %595 }
 0x171   : > { %6634 = vst [vmem:[#allocation80_spill] sm:$0xff] %v4684_v48 }
 0x172   : > { %v2147_v16 = vrot.slane %v2139_v39, %v4285_v57  ;;  %6632 = vst [vmem:[#allocation78_spill] sm:$0xff] %v4662_v31 }
 0x173   : > { %v4651_v7 = vpop.permute.xlu0 %701 }
 0x174   : > { %6630 = vst [vmem:[#allocation76_spill] sm:$0xff] %v4651_v7  ;;  %v2155_v24 = vcombine.low %v4641_v2, %v4651_v7  ;;  %v4690_v15 = vpop.permute.xlu1 %606 }
 0x175   : > { %6635 = vst [vmem:[#allocation81_spill] sm:$0xff] %v4690_v15 }
 0x176   : > { %v2163_v19 = vrot.slane %v2155_v24, %v4285_v57 }
 0x177   : > { %v4657_v3 = vpop.permute.xlu0 %712 }
 0x178   : > { %v2203_v47 = vcombine.low %v2147_v16, %v2163_v19  ;;  %v2204_v26 = vcombine.high %v2147_v16, %v2163_v19  ;;  %v4694_v2 = vpop.permute.xlu1 %617 }
 0x179   : > { %6636 = vst [vmem:[#allocation82_spill] sm:$0xff] %v4694_v2 }
 0x17a   : > { %v4665_v59 = vrot.slane %v2203_v47, %v4324_v29  ;;  %v4671_v11 = vrot.slane %v2204_v26, %v4324_v29 }
 0x17b   : > { %v4673_v39 = vpop.permute.xlu0 %723 }
 0x17c   : > { %6633 = vst [vmem:[#allocation79_spill] sm:$0xff] %v4665_v59  ;;  %v2236_v1 = vcombine.high %v4662_v31, %v4665_v59  ;;  %v4704_v59 = vpop.permute.xlu1 %628 }
 0x17d   : > { %6637 = vst [vmem:[#allocation83_spill] sm:$0xff] %v4704_v59 }
 0x17e   : > { %3077 = vrot.lane.b32.xlu1 %v2236_v1, %s4056_s18 }
 0x17f   : > { %v4686_v26 = vpop.permute.xlu0 %734 }
 0x180   : > { %v2515_v1 = vcombine.low %v4657_v3, %v4686_v26  ;;  %v4716_v33 = vpop.permute.xlu1 %639 }
 0x181   : > { %6638 = vst [vmem:[#allocation84_spill] sm:$0xff] %v4716_v33 }
 0x182   : > { %v2523_v2 = vrot.slane %v2515_v1, %v4285_v57 }
 0x183   : > { %v4688_v24 = vpop.permute.xlu0 %745 }
 0x184   : > { %v2531_v19 = vcombine.low %v4673_v39, %v4688_v24  ;;  %v4730_v8 = vpop.permute.xlu1 %650 }
 0x185   : > { %6641 = vst [vmem:[#allocation87_spill] sm:$0xff] %v4730_v8  ;;  %v884_v8 = vcombine.high %v4270_v45, %v4281_v55 }
 0x186   : > { %v2539_v31 = vrot.slane %v2531_v19, %v4285_v57 }
 0x187   : > { %v4692_v10 = vpop.permute.xlu0 %756 }
 0x188   : > { %v2579_v27 = vcombine.low %v2523_v2, %v2539_v31  ;;  %v2580_v21 = vcombine.high %v2523_v2, %v2539_v31 }
 0x18a   : > { %v4721_v53 = vrot.slane %v2579_v27, %v4324_v29  ;;  %v6642_v27 = vcombine.low %v4343_v40, %v4346_v41 }
 0x18b   : > { %v4696_v16 = vpop.permute.xlu0 %767 }
 0x18c   : > { %6639 = vst [vmem:[#allocation85_spill] sm:$0xff] %v4721_v53 }
 0x18f   : > { %v4700_v47 = vpop.permute.xlu0 %778 }
 0x190   : > { %v2547_v48 = vcombine.low %v4692_v10, %v4700_v47 }
 0x192   : > { %v2555_v4 = vrot.slane %v2547_v48, %v4285_v57 }
 0x193   : > { %v4709_v15 = vpop.permute.xlu0 %789 }
 0x194   : > { %v2563_v7 = vcombine.low %v4696_v16, %v4709_v15 }
 0x196   : > { %v2571_v14 = vrot.slane %v2563_v7, %v4285_v57  ;;  %v6644_v7 = vcombine.low %v4475_v46, %v4478_v42 }
 0x197   : > { %v4718_v59 = vpop.permute.xlu0 %800 }
 0x198   : > { %v2611_v19 = vcombine.low %v2555_v4, %v2571_v14  ;;  %v2612_v23 = vcombine.high %v2555_v4, %v2571_v14 }
 0x19a   : > { %v4724_v38 = vrot.slane %v2611_v19, %v4324_v29  ;;  %v4741_v19 = vpop.permute.xlu1 %661 }
 0x19b   : > { %v4726_v1 = vpop.permute.xlu0 %811  ;;  %6643 = vst [vmem:[#allocation88_spill] sm:$0xff] %v4741_v19  ;;  %v2594_v19 = vrot.slane %v2580_v21, %v4324_v29 }
 0x19c   : > { %6640 = vst [vmem:[#allocation86_spill] sm:$0xff] %v4724_v38  ;;  %v2644_v58 = vcombine.high %v4721_v53, %v4724_v38  ;;  %v2626_v38 = vrot.slane %v2612_v23, %v4324_v29  ;;  %v932_v23 = vcombine.high %v4305_v12, %v4317_v25 }
 0x19e   : > { %3079 = vrot.lane.b32.xlu0 %v2644_v58, %s4056_s18  ;;  %v4752_v53 = vpop.permute.xlu1 %672  ;;  %v2645_v14 = vcombine.low %v2594_v19, %v2626_v38 }
 0x19f   : > { %v4735_v48 = vpop.permute.xlu0 %822  ;;  %6645 = vst [vmem:[#allocation89_spill] sm:$0xff] %v4752_v53  ;;  %v916_v53 = vcombine.high %v4300_v5, %v4310_v20  ;;  %v1476_v5 = vcombine.high %v4442_v18, %v4452_v61  ;;  %v1460_v61 = vcombine.high %v4437_v43, %v4447_v36  ;;  %v2020_v36 = vcombine.high %v4582_v17, %v4590_v13 }
 0x1a0   : > { %v2651_v21 = vcombine.low %v4718_v59, %v4735_v48 }
 0x1a2   : > { %3099 = vrot.lane.b32.xlu0 %v6642_v27, %s4057_s27  ;;  %v6646_v27 = vcombine.low %v4607_v37, %v4610_v32  ;;  %v4766_v31 = vpop.permute.xlu1 %683  ;;  %v4798_v55 = vrot.slane %v2651_v21, %v4285_v57 }
 0x1a3   : > { %v4743_v33 = vpop.permute.xlu0 %833  ;;  %6647 = vst [vmem:[#allocation90_spill] sm:$0xff] %v4766_v31 }
 0x1a4   : > { %v2667_v2 = vcombine.low %v4726_v1, %v4743_v33 }
 0x1a6   : > { %3103 = vrot.lane.b32.xlu0 %v6644_v7, %s4057_s27  ;;  %v4809_v18 = vpop.permute.xlu1 %694 }
 0x1a7   : > { %v4749_v58 = vpop.permute.xlu0 %844  ;;  %6649 = vst [vmem:[#allocation91_spill] sm:$0xff] %v4809_v18 }
 0x1aa   : > { %3107 = vrot.lane.b32.xlu0 %v6646_v27, %s4057_s27  ;;  %v900_v27 = vcombine.high %v4268_v44, %v4291_v60  ;;  %v6648_v44 = vcombine.high %v4343_v40, %v4346_v41  ;;  %v4788_v60 = vrot.slane %v932_v23, %v4285_v57  ;;  %v4803_v40 = vrot.slane %v916_v53, %v4285_v57 }
 0x1ab   : > { %v4759_v4 = vpop.permute.xlu0 %855  ;;  %v1444_v41 = vcombine.high %v4399_v22, %v4430_v34  ;;  %v6650_v53 = vcombine.high %v4475_v46, %v4478_v42  ;;  %v1428_v22 = vcombine.high %v4396_v52, %v4423_v56  ;;  %v4837_v46 = vrot.slane %v1460_v61, %v4285_v57 }
 0x1ac   : > { %v4795_v45 = vrot.slane %v900_v27, %v4285_v57  ;;  %v995_v43 = vcombine.low %v4803_v40, %v4788_v60  ;;  %v1988_v42 = vcombine.high %v4543_v62, %v4562_v9  ;;  %v2004_v52 = vcombine.high %v4574_v50, %v4586_v54  ;;  %v4860_v9 = vpop.permute.xlu1 %705 }
 0x1ad   : > { %v6651_v56 = vcombine.high %v4607_v37, %v4610_v32  ;;  %v1972_v50 = vcombine.high %v4526_v49, %v4554_v63  ;;  %6654 = vst [vmem:[#allocation94_spill] sm:$0xff] %v4860_v9  ;;  %v4864_v37 = vrot.slane %v2020_v36, %v4285_v57  ;;  %v2564_v54 = vcombine.high %v4696_v16, %v4709_v15 }
 0x1ae   : > { %3111 = vrot.lane.b32.xlu0 %v2645_v14, %s4057_s27  ;;  %v4779_v14 = vrot.slane %v2667_v2, %v4285_v57  ;;  %v4812_v2 = vrot.slane %v884_v8, %v4285_v57  ;;  %v4827_v8 = vrot.slane %v1476_v5, %v4285_v57  ;;  %v4854_v5 = vrot.slane %v1428_v22, %v4285_v57 }
 0x1af   : > { %v4768_v7 = vpop.permute.xlu0 %866  ;;  %v1003_v32 = vrot.slane %v995_v43, %v4324_v29  ;;  %v4876_v49 = vrot.slane %v2004_v52, %v4285_v57  ;;  %v4889_v43 = vrot.slane %v1972_v50, %v4285_v57 }
 0x1b0   : > { %v2683_v12 = vcombine.low %v4749_v58, %v4768_v7  ;;  %v2715_v23 = vcombine.low %v4798_v55, %v4779_v14  ;;  %v963_v34 = vcombine.low %v4812_v2, %v4795_v45  ;;  %v1539_v62 = vcombine.low %v4837_v46, %v4827_v8 }
 0x1b1   : > { %v2083_v22 = vcombine.low %v4876_v49, %v4864_v37 }
 0x1b2   : > { %3131 = vrot.lane.b32.xlu0 %v6648_v44, %s4058_s29  ;;  %v2691_v27 = vrot.slane %v2683_v12, %v4285_v57  ;;  %v4834_v44 = vrot.slane %v1444_v41, %v4285_v57  ;;  %v4848_v13 = vrot.slane %v2715_v23, %v4324_v29  ;;  %v4873_v23 = vrot.slane %v1988_v42, %v4285_v57 }
 0x1b3   : > { %v4792_v20 = vpop.permute.xlu0 %877  ;;  %v971_v63 = vrot.slane %v963_v34, %v4324_v29 }
 0x1b4   : > { %v2699_v25 = vcombine.low %v4759_v4, %v4792_v20  ;;  %6652 = vst [vmem:[#allocation92_spill] sm:$0xff] %v4848_v13  ;;  %v1507_v61 = vcombine.low %v4854_v5, %v4834_v44  ;;  %v2051_v34 = vcombine.low %v4889_v43, %v4873_v23 }
 0x1b5   : > { %v1015_v15 = vcombine.low %v971_v63, %v1003_v32 }
 0x1b6   : > { %v2707_v21 = vrot.slane %v2699_v25, %v4285_v57  ;;  %3135 = vrot.lane.b32.xlu0 %v6650_v53, %s4058_s29  ;;  %v2646_v25 = vcombine.high %v2594_v19, %v2626_v38  ;;  %v2532_v53 = vcombine.high %v4673_v39, %v4688_v24  ;;  %v2548_v38 = vcombine.high %v4692_v10, %v4700_v47  ;;  %v4898_v47 = vpop.permute.xlu1 %716 }
 0x1b7   : > { %v1547_v19 = vrot.slane %v1539_v62, %v4324_v29  ;;  %v2516_v39 = vcombine.high %v4657_v3, %v4686_v26  ;;  %v4896_v10 = vrot.slane %v2564_v54, %v4285_v57  ;;  %6655 = vst [vmem:[#allocation95_spill] sm:$0xff] %v4898_v47  ;;  %v1515_v24 = vrot.slane %v1507_v61, %v4324_v29 }
 0x1b8   : > { %v2747_v12 = vcombine.low %v2691_v27, %v2707_v21  ;;  %v4904_v36 = vrot.slane %v2532_v53, %v4285_v57  ;;  %v6656_v3 = vcombine.low %v4408_v0, %v4411_v6  ;;  %v2091_v62 = vrot.slane %v2083_v22, %v4324_v29 }
 0x1b9   : > { %v1559_v26 = vcombine.low %v1515_v24, %v1547_v19  ;;  %v4915_v42 = vrot.slane %v2516_v39, %v4285_v57  ;;  %v2716_v54 = vcombine.high %v4798_v55, %v4779_v14  ;;  %v6659_v14 = vcombine.low %v4668_v35, %v4671_v11 }
 0x1ba   : > { %3139 = vrot.lane.b32.xlu0 %v6651_v56, %s4058_s29  ;;  %v4851_v17 = vrot.slane %v2747_v12, %v4324_v29  ;;  %v4907_v12 = vrot.slane %v2548_v38, %v4285_v57  ;;  %v2748_v56 = vcombine.high %v2691_v27, %v2707_v21  ;;  %v4930_v61 = vpop.permute.xlu1 %727 }
 0x1bb   : > { %v2595_v50 = vcombine.low %v4915_v42, %v4904_v36  ;;  %6658 = vst [vmem:[#allocation96_spill] sm:$0xff] %v4930_v61  ;;  %v2730_v38 = vrot.slane %v2716_v54, %v4324_v29 }
 0x1bc   : > { %6653 = vst [vmem:[#allocation93_spill] sm:$0xff] %v4851_v17  ;;  %v2780_v41 = vcombine.high %v4848_v13, %v4851_v17  ;;  %v2627_v52 = vcombine.low %v4907_v12, %v4896_v10  ;;  %v4936_v53 = vrot.slane %v2748_v56, %v4324_v29 }
 0x1bd   : > { %v2603_v55 = vrot.slane %v2595_v50, %v4324_v29  ;;  %v6664_v50 = vld [vmem:[#allocation24_spill] sm:$0xff] }
 0x1be   : > { %3143 = vrot.lane.b32.xlu0 %v2646_v25, %s4058_s29  ;;  %3081 = vrot.lane.b32.xlu1 %v2780_v41, %s4056_s18  ;;  %v6657_v25 = vcombine.low %v4538_v51, %v4541_v28  ;;  %v2059_v41 = vrot.slane %v2051_v34, %v4324_v29  ;;  %v4933_v21 = vrot.slane %v2627_v52, %v4324_v29  ;;  %v4947_v39 = vpop.permute.xlu1 %738  ;;  %v6661_v34 = vld [vmem:[#allocation28_spill] sm:$0xff]  ;;  %v6663_v52 = vld [vmem:[#allocation26_spill] sm:$0xff]  ;;  %s3743_s18 = sshll.u32 %s6304_s3, 4  ;;  %s6397_s18 = int_to_ptr.vmem [resolvable:$true] %s3743_s18 }
 0x1bf   : > { %v2781_v22 = vcombine.low %v2730_v38, %v4936_v53  ;;  %6660 = vst [vmem:[#allocation97_spill] sm:$0xff] %v4947_v39 }
 0x1c0   : > { %v2103_v27 = vcombine.low %v2059_v41, %v2091_v62 }
 0x1c2   : > { %3163 = vrot.lane.b32.xlu0 %v1015_v15, %s4059_s30  ;;  %3101 = vrot.lane.b32.xlu1 %v6656_v3, %s4057_s27  ;;  %v2647_v15 = vcombine.low %v2603_v55, %v4933_v21  ;;  %v1068_v3 = vcombine.high %v6661_v34, %v4387_v30  ;;  %v6666_v30 = vcombine.high %v4408_v0, %v4411_v6  ;;  %v6670_v34 = vld [vmem:[#allocation49_spill] sm:$0xff]  ;;  %v6672_v0 = vld [vmem:[#allocation46_spill] sm:$0xff] }
 0x1c3   : > { %v6673_v6 = vld [vmem:[#allocation41_spill] sm:$0xff] }
 0x1c4   : > { %v4960_v16 = vrot.slane %v1068_v3, %v4285_v57  ;;  %v1560_v3 = vcombine.high %v1515_v24, %v1547_v19  ;;  %v6677_v24 = vld [vmem:[#allocation44_spill] sm:$0xff] }
 0x1c6   : > { %3167 = vrot.lane.b32.xlu0 %v1559_v26, %s4059_s30  ;;  %3105 = vrot.lane.b32.xlu1 %v6657_v25, %s4057_s27  ;;  %v6662_v26 = vld [vmem:[#allocation29_spill] sm:$0xff]  ;;  %v1016_v25 = vcombine.high %v971_v63, %v1003_v32 }
 0x1c7   : > { %v1052_v56 = vcombine.high %v6663_v52, %v6662_v26  ;;  %v6669_v63 = vld [vmem:[#allocation53_spill] sm:$0xff]  ;;  %v4971_v52 = vpop.permute.xlu1 %749 }
 0x1c8   : > { %v1612_v26 = vcombine.high %v6670_v34, %v6669_v63  ;;  %6671 = vst [vmem:[#allocation28_spill] sm:$0xff] %v4971_v52  ;;  %v6679_v34 = vld [vmem:[#allocation76_spill] sm:$0xff] }
 0x1ca   : > { %3171 = vrot.lane.b32.xlu0 %v2103_v27, %s4059_s30  ;;  %3109 = vrot.lane.b32.xlu1 %v6659_v14, %s4057_s27  ;;  %v6665_v27 = vld [vmem:[#allocation19_spill] sm:$0xff]  ;;  %v996_v14 = vcombine.high %v4803_v40, %v4788_v60  ;;  %v964_v60 = vcombine.high %v4812_v2, %v4795_v45  ;;  %v4976_v40 = vrot.slane %v1052_v56, %v4285_v57 }
 0x1cb   : > { %v1036_v54 = vcombine.high %v6665_v27, %v6664_v50  ;;  %v1580_v50 = vcombine.high %v6673_v6, %v6672_v0  ;;  %v6674_v27 = vld [vmem:[#allocation51_spill] sm:$0xff]  ;;  %v6676_v45 = vcombine.high %v4538_v51, %v4541_v28  ;;  %v5001_v63 = vrot.slane %v1612_v26, %v4285_v57  ;;  %v6680_v0 = vld [vmem:[#allocation72_spill] sm:$0xff] }
 0x1cc   : > { %v4993_v2 = vrot.slane %v996_v14, %v4324_v29  ;;  %v6678_v56 = vld [vmem:[#allocation39_spill] sm:$0xff]  ;;  %v2104_v6 = vcombine.high %v2059_v41, %v2091_v62  ;;  %v6686_v41 = vcombine.high %v4668_v35, %v4671_v11  ;;  %v2700_v11 = vcombine.high %v4759_v4, %v4792_v20 }
 0x1cd   : > { %v5011_v28 = vrot.slane %v1580_v50, %v4285_v57  ;;  %v2668_v4 = vcombine.high %v4726_v1, %v4743_v33  ;;  %v2684_v20 = vcombine.high %v4749_v58, %v4768_v7  ;;  %v2652_v7 = vcombine.high %v4718_v59, %v4735_v48 }
 0x1ce   : > { %3175 = vrot.lane.b32.xlu0 %v2647_v15, %s4059_s30  ;;  %3113 = vrot.lane.b32.xlu1 %v2781_v22, %s4057_s27  ;;  %v6667_v15 = vld [vmem:[#allocation23_spill] sm:$0xff]  ;;  %v6668_v22 = vld [vmem:[#allocation17_spill] sm:$0xff] }
 0x1cf   : > { %v1020_v32 = vcombine.high %v6668_v22, %v6667_v15  ;;  %v1131_v22 = vcombine.low %v4976_v40, %v4960_v16  ;;  %v5103_v59 = vrot.slane %v2684_v20, %v4285_v57  ;;  %v6693_v20 = vld [vmem:[#allocation14_spill] sm:$0xff] }
 0x1d1   : > { %v4996_v19 = vrot.slane %v1020_v32, %v4285_v57  ;;  %v6681_v32 = vld [vmem:[#allocation69_spill] sm:$0xff]  ;;  %v5030_v50 = vrot.slane %v1131_v22, %v4324_v29  ;;  %v2648_v22 = vcombine.high %v2603_v55, %v4933_v21 }
 0x1d2   : > { %3195 = vrot.lane.b32.xlu0 %v1016_v25, %s4060_s2  ;;  %3133 = vrot.lane.b32.xlu1 %v6666_v30, %s4058_s29  ;;  %v4979_v25 = vrot.slane %v1036_v54, %v4285_v57  ;;  %v6675_v30 = vld [vmem:[#allocation48_spill] sm:$0xff]  ;;  %v1564_v54 = vcombine.high %v6678_v56, %v6677_v24  ;;  %v6684_v24 = vld [vmem:[#allocation74_spill] sm:$0xff]  ;;  %v6685_v56 = vld [vmem:[#allocation71_spill] sm:$0xff] }
 0x1d3   : > { %v1596_v15 = vcombine.high %v6675_v30, %v6674_v27  ;;  %v5006_v27 = vrot.slane %v964_v60, %v4324_v29  ;;  %v6682_v30 = vld [vmem:[#allocation66_spill] sm:$0xff]  ;;  %v2140_v62 = vcombine.high %v6685_v56, %v6684_v24  ;;  %v2782_v24 = vcombine.high %v2730_v38, %v4936_v53 }
 0x1d4   : > { %v1099_v51 = vcombine.low %v4996_v19, %v4979_v25  ;;  %v2124_v26 = vcombine.high %v6682_v30, %v6681_v32  ;;  %v6688_v32 = vld [vmem:[#allocation62_spill] sm:$0xff] }
 0x1d5   : > { %v5014_v14 = vrot.slane %v1596_v15, %v4285_v57  ;;  %v1017_v60 = vcombine.low %v5006_v27, %v4993_v2  ;;  %v1540_v15 = vcombine.high %v4837_v46, %v4827_v8  ;;  %v1508_v8 = vcombine.high %v4854_v5, %v4834_v44 }
 0x1d6   : > { %3199 = vrot.lane.b32.xlu0 %v1560_v3, %s4060_s2  ;;  %3137 = vrot.lane.b32.xlu1 %v6676_v45, %s4058_s29  ;;  %v2156_v3 = vcombine.high %v6680_v0, %v6679_v34  ;;  %v5018_v45 = vpop.permute.xlu1 %760  ;;  %v5035_v34 = vrot.slane %v1564_v54, %v4285_v57  ;;  %v5053_v54 = vrot.slane %v2124_v26, %v4285_v57 }
 0x1d7   : > { %6683 = vst [vmem:[#allocation29_spill] sm:$0xff] %v5018_v45  ;;  %v1675_v0 = vcombine.low %v5014_v14, %v5001_v63  ;;  %v5056_v56 = vrot.slane %v1099_v51, %v4324_v29  ;;  %v2084_v44 = vcombine.high %v4876_v49, %v4864_v37  ;;  %v5074_v53 = vrot.slane %v1540_v15, %v4324_v29 }
 0x1d8   : > { %v5042_v35 = vrot.slane %v2156_v3, %v4285_v57  ;;  %v1643_v46 = vcombine.low %v5035_v34, %v5011_v28  ;;  %v5059_v3 = vrot.slane %v2140_v62, %v4285_v57  ;;  %v5087_v37 = vrot.slane %v2700_v11, %v4285_v57 }
 0x1d9   : > { %v1151_v21 = vcombine.low %v5056_v56, %v5030_v50  ;;  %v5077_v33 = vrot.slane %v1675_v0, %v4324_v29  ;;  %v2052_v49 = vcombine.high %v4889_v43, %v4873_v23  ;;  %v5092_v55 = vrot.slane %v1508_v8, %v4324_v29  ;;  %v6691_v8 = vld [vmem:[#allocation11_spill] sm:$0xff] }
 0x1da   : > { %3203 = vrot.lane.b32.xlu0 %v2104_v6, %s4060_s2  ;;  %3141 = vrot.lane.b32.xlu1 %v6686_v41, %s4058_s29  ;;  %v6687_v6 = vld [vmem:[#allocation67_spill] sm:$0xff]  ;;  %v5069_v5 = vpop.permute.xlu1 %771  ;;  %v2219_v58 = vcombine.low %v5059_v3, %v5042_v35  ;;  %v5095_v38 = vrot.slane %v1643_v46, %v4324_v29  ;;  %v5100_v26 = vrot.slane %v2668_v4, %v4285_v57  ;;  %v6692_v46 = vld [vmem:[#allocation8_spill] sm:$0xff] }
 0x1db   : > { %v2108_v30 = vcombine.high %v6688_v32, %v6687_v6  ;;  %6689 = vst [vmem:[#allocation26_spill] sm:$0xff] %v5069_v5  ;;  %v1561_v48 = vcombine.low %v5092_v55, %v5074_v53  ;;  %v5112_v43 = vrot.slane %v2084_v44, %v4324_v29  ;;  %v2628_v62 = vcombine.high %v4907_v12, %v4896_v10  ;;  %v6694_v44 = vld [vmem:[#allocation12_spill] sm:$0xff] }
 0x1dc   : > { %v1695_v23 = vcombine.low %v5095_v38, %v5077_v33  ;;  %v5117_v41 = vrot.slane %v2652_v7, %v4285_v57  ;;  %v5122_v15 = vrot.slane %v2219_v58, %v4324_v29  ;;  %v5127_v6 = vrot.slane %v2052_v49, %v4324_v29  ;;  %v6695_v58 = vld [vmem:[#allocation15_spill] sm:$0xff]  ;;  %v6696_v7 = vld [vmem:[#allocation13_spill] sm:$0xff] }
 0x1dd   : > { %v5080_v1 = vrot.slane %v2108_v30, %v4285_v57  ;;  %v2596_v32 = vcombine.high %v4915_v42, %v4904_v36  ;;  %v1171_v4 = vcombine.low %v6692_v46, %v6691_v8  ;;  %v1203_v49 = vcombine.low %v6696_v7, %v6695_v58  ;;  %v6703_v46 = vld [vmem:[#allocation36_spill] sm:$0xff] }
 0x1de   : > { %3207 = vrot.lane.b32.xlu0 %v2648_v22, %s4060_s2  ;;  %3145 = vrot.lane.b32.xlu1 %v2782_v24, %s4058_s29  ;;  %v5124_v0 = vpop.permute.xlu1 %782  ;;  %v2731_v10 = vcombine.low %v5117_v41, %v5100_v26  ;;  %v2105_v30 = vcombine.low %v5127_v6, %v5112_v43  ;;  %v5140_v22 = vrot.slane %v2628_v62, %v4324_v29  ;;  %v6705_v7 = vld [vmem:[#allocation40_spill] sm:$0xff] }
 0x1df   : > { %v2187_v51 = vcombine.low %v5080_v1, %v5053_v54  ;;  %6690 = vst [vmem:[#allocation24_spill] sm:$0xff] %v5124_v0  ;;  %v5148_v36 = vrot.slane %v2596_v32, %v4324_v29  ;;  %v1018_v13 = vcombine.high %v5006_v27, %v4993_v2 }
 0x1e0   : > { %v5151_v42 = vrot.slane %v2731_v10, %v4324_v29  ;;  %v5170_v10 = vrot.slane %v1171_v4, %v4285_v57  ;;  %v6702_v4 = vld [vmem:[#allocation38_spill] sm:$0xff] }
 0x1e1   : > { %v2195_v12 = vrot.slane %v2187_v51, %v4324_v29  ;;  %v1715_v8 = vcombine.low %v6703_v46, %v6702_v4  ;;  %v6716_v46 = vld [vmem:[#allocation80_spill] sm:$0xff] }
 0x1e2   : > { %3227 = vrot.lane.b32.xlu0 %v1017_v60, %s4061_s5  ;;  %3165 = vrot.lane.b32.xlu1 %v1151_v21, %s4059_s30  ;;  %v2763_v60 = vcombine.low %v5103_v59, %v5087_v37  ;;  %v1187_v21 = vcombine.low %v6694_v44, %v6693_v20  ;;  %v5159_v51 = vpop.permute.xlu1 %793  ;;  %v6707_v44 = vld [vmem:[#allocation45_spill] sm:$0xff] }
 0x1e3   : > { %v2239_v11 = vcombine.low %v2195_v12, %v5122_v15  ;;  %6697 = vst [vmem:[#allocation19_spill] sm:$0xff] %v5159_v51 }
 0x1e4   : > { %v5143_v24 = vrot.slane %v2763_v60, %v4324_v29  ;;  %v2649_v60 = vcombine.low %v5148_v36, %v5140_v22 }
 0x1e6   : > { %3231 = vrot.lane.b32.xlu0 %v1561_v48, %s4061_s5  ;;  %3169 = vrot.lane.b32.xlu1 %v1695_v23, %s4059_s30  ;;  %v6698_v48 = vld [vmem:[#allocation10_spill] sm:$0xff]  ;;  %v6699_v23 = vld [vmem:[#allocation9_spill] sm:$0xff]  ;;  %v2783_v32 = vcombine.low %v5151_v42, %v5143_v24 }
 0x1e7   : > { %v1155_v62 = vcombine.low %v6699_v23, %v6698_v48  ;;  %v6700_v23 = vld [vmem:[#allocation37_spill] sm:$0xff] }
 0x1e9   : > { %v5179_v17 = vrot.slane %v1155_v62, %v4285_v57  ;;  %v5193_v62 = vpop.permute.xlu1 %804 }
 0x1ea   : > { %3235 = vrot.lane.b32.xlu0 %v2105_v30, %s4061_s5  ;;  %3173 = vrot.lane.b32.xlu1 %v2239_v11, %s4059_s30  ;;  %v5173_v30 = vrot.slane %v1187_v21, %v4285_v57  ;;  %v5176_v11 = vrot.slane %v1203_v49, %v4285_v57  ;;  %v6704_v21 = vld [vmem:[#allocation47_spill] sm:$0xff]  ;;  %v6706_v49 = vld [vmem:[#allocation50_spill] sm:$0xff]  ;;  %6708 = vst [vmem:[#allocation23_spill] sm:$0xff] %v5193_v62 }
 0x1eb   : > { %v1731_v58 = vcombine.low %v6705_v7, %v6704_v21  ;;  %v1747_v20 = vcombine.low %v6707_v44, %v6706_v49  ;;  %v1219_v2 = vcombine.low %v5179_v17, %v5170_v10  ;;  %v1562_v44 = vcombine.high %v5092_v55, %v5074_v53  ;;  %v6711_v21 = vld [vmem:[#allocation75_spill] sm:$0xff]  ;;  %v6712_v53 = vld [vmem:[#allocation70_spill] sm:$0xff] }
 0x1ec   : > { %v1251_v27 = vcombine.low %v5173_v30, %v5176_v11  ;;  %v5213_v49 = vrot.slane %v1715_v8, %v4285_v57  ;;  %v2259_v55 = vcombine.low %v6712_v53, %v6711_v21 }
 0x1ed   : > { %v5216_v7 = vrot.slane %v1731_v58, %v4285_v57  ;;  %v5231_v4 = vpop.permute.xlu1 %815 }
 0x1ee   : > { %3239 = vrot.lane.b32.xlu0 %v2649_v60, %s4061_s5  ;;  %3177 = vrot.lane.b32.xlu1 %v2783_v32, %s4059_s30  ;;  %v1152_v60 = vcombine.high %v5056_v56, %v5030_v50  ;;  %v6701_v32 = vld [vmem:[#allocation35_spill] sm:$0xff]  ;;  %v1100_v50 = vcombine.high %v4996_v19, %v4979_v25  ;;  %v1132_v56 = vcombine.high %v4976_v40, %v4960_v16  ;;  %v6709_v19 = vld [vmem:[#allocation73_spill] sm:$0xff]  ;;  %v6710_v16 = vld [vmem:[#allocation68_spill] sm:$0xff] }
 0x1ef   : > { %v1699_v48 = vcombine.low %v6701_v32, %v6700_v23  ;;  %v5219_v25 = vrot.slane %v1747_v20, %v4285_v57  ;;  %v2243_v40 = vcombine.low %v6710_v16, %v6709_v19  ;;  %6717 = vst [vmem:[#allocation17_spill] sm:$0xff] %v5231_v4  ;;  %v2106_v20 = vcombine.high %v5127_v6, %v5112_v43 }
 0x1f0   : > { %v2240_v16 = vcombine.high %v2195_v12, %v5122_v15  ;;  %v5237_v19 = vrot.slane %v1219_v2, %v4324_v29  ;;  %v1676_v43 = vcombine.high %v5014_v14, %v5001_v63  ;;  %v5258_v6 = vrot.slane %v2259_v55, %v4285_v57 }
 0x1f1   : > { %v5255_v15 = vrot.slane %v2243_v40, %v4285_v57  ;;  %v2803_v63 = vcombine.low %v4930_v61, %v4971_v52  ;;  %v2819_v14 = vcombine.low %v5018_v45, %v5124_v0  ;;  %v1644_v40 = vcombine.high %v5035_v34, %v5011_v28  ;;  %v5282_v55 = vpop.permute.xlu1 %826  ;;  %v6728_v45 = vld [vmem:[#allocation27_spill] sm:$0xff] }
 0x1f2   : > { %3259 = vrot.lane.b32.xlu0 %v1018_v13, %s4062_s12  ;;  %3197 = vrot.lane.b32.xlu1 %v1152_v60, %s4060_s2  ;;  %v1696_v13 = vcombine.high %v5095_v38, %v5077_v33  ;;  %v5210_v60 = vrot.slane %v1699_v48, %v4285_v57  ;;  %v6713_v33 = vld [vmem:[#allocation81_spill] sm:$0xff]  ;;  %v6715_v48 = vld [vmem:[#allocation82_spill] sm:$0xff]  ;;  %6718 = vst [vmem:[#allocation53_spill] sm:$0xff] %v5282_v55 }
 0x1f3   : > { %v6714_v38 = vld [vmem:[#allocation77_spill] sm:$0xff]  ;;  %v2291_v58 = vcombine.low %v6716_v46, %v6715_v48  ;;  %v5247_v46 = vrot.slane %v1100_v50, %v4324_v29  ;;  %v5250_v48 = vrot.slane %v1132_v56, %v4324_v29  ;;  %v2835_v50 = vcombine.low %v5069_v5, %v5159_v51  ;;  %v6726_v5 = vld [vmem:[#allocation18_spill] sm:$0xff] }
 0x1f4   : > { %v2275_v8 = vcombine.low %v6714_v38, %v6713_v33  ;;  %v1795_v38 = vcombine.low %v5216_v7, %v5219_v25  ;;  %v2650_v56 = vcombine.high %v5148_v36, %v5140_v22  ;;  %v2307_v28 = vcombine.low %v5255_v15, %v5258_v6  ;;  %v6739_v33 = vld [vmem:[#allocation65_spill] sm:$0xff] }
 0x1f5   : > { %v5266_v2 = vrot.slane %v2291_v58, %v4285_v57  ;;  %v1153_v58 = vcombine.low %v5247_v46, %v5250_v48  ;;  %v2220_v36 = vcombine.high %v5059_v3, %v5042_v35  ;;  %v2188_v35 = vcombine.high %v5080_v1, %v5053_v54  ;;  %v5322_v3 = vpop.permute.xlu0 %3067 }
 0x1f6   : > { %3263 = vrot.lane.b32.xlu0 %v1562_v44, %s4062_s12  ;;  %3201 = vrot.lane.b32.xlu1 %v1696_v13, %s4060_s2  ;;  %v5240_v44 = vrot.slane %v1251_v27, %v4324_v29  ;;  %v1763_v13 = vcombine.low %v5210_v60, %v5213_v49  ;;  %v5263_v12 = vrot.slane %v2275_v8, %v4285_v57 }
 0x1f7   : > { %v2787_v27 = vcombine.low %v4898_v47, %v4947_v39  ;;  %6719 = vst [vmem:[#allocation49_spill] sm:$0xff] %v5322_v3  ;;  %v6737_v47 = vld [vmem:[#allocation61_spill] sm:$0xff] }
 0x1f8   : > { %v1283_v8 = vcombine.low %v5237_v19, %v5240_v44  ;;  %v5291_v22 = vrot.slane %v1763_v13, %v4324_v29  ;;  %v2339_v34 = vcombine.low %v5263_v12, %v5266_v2  ;;  %v5309_v13 = vrot.slane %v2803_v63, %v4285_v57 }
 0x1f9   : > { %v5356_v3 = vpop.permute.xlu0 %3071 }
 0x1fa   : > { %3267 = vrot.lane.b32.xlu0 %v2106_v20, %s4062_s12  ;;  %3205 = vrot.lane.b32.xlu1 %v2240_v16, %s4060_s2  ;;  %v2784_v16 = vcombine.high %v5151_v42, %v5143_v24  ;;  %v5294_v24 = vrot.slane %v1795_v38, %v4324_v29  ;;  %v5303_v42 = vrot.slane %v1676_v43, %v4324_v29  ;;  %v5326_v43 = vpop.permute.xlu1 %837 }
 0x1fb   : > { %v5306_v20 = vrot.slane %v2787_v27, %v4285_v57  ;;  %v5312_v38 = vrot.slane %v2819_v14, %v4285_v57  ;;  %6720 = vst [vmem:[#allocation46_spill] sm:$0xff] %v5326_v43  ;;  %v5333_v14 = vrot.slane %v2307_v28, %v4324_v29  ;;  %v5336_v54 = vrot.slane %v2339_v34, %v4324_v29 }
 0x1fc   : > { %v1827_v27 = vcombine.low %v5291_v22, %v5294_v24  ;;  %v5352_v28 = vrot.slane %v2188_v35, %v4324_v29  ;;  %6721 = vst [vmem:[#allocation41_spill] sm:$0xff] %v5356_v3 }
 0x1fd   : > { %v2851_v1 = vcombine.low %v5306_v20, %v5309_v13  ;;  %v2371_v34 = vcombine.low %v5333_v14, %v5336_v54 }
 0x1fe   : > { %3271 = vrot.lane.b32.xlu0 %v2650_v56, %s4062_s12  ;;  %3209 = vrot.lane.b32.xlu1 %v2784_v16, %s4060_s2  ;;  %v5315_v56 = vrot.slane %v2835_v50, %v4285_v57  ;;  %v5318_v16 = vrot.slane %v1644_v40, %v4324_v29  ;;  %v2764_v40 = vcombine.high %v5103_v59, %v5087_v37  ;;  %s6395_s2 = scalar_lea.hbm %s6450_s1, %s3853_s28 }
 0x1ff   : > { %v5361_v59 = vrot.slane %v2851_v1, %v4324_v29  ;;  %v6725_v1 = vld [vmem:[#allocation25_spill] sm:$0xff] }
 0x200   : > { %v1697_v63 = vcombine.low %v5318_v16, %v5303_v42  ;;  %v2883_v50 = vcombine.low %v5312_v38, %v5315_v56  ;;  %v1307_v51 = vcombine.low %v6726_v5, %v6725_v1 }
 0x202   : > { %3291 = vrot.lane.b32.xlu0 %v1283_v8, %s4063_s13  ;;  %3229 = vrot.lane.b32.xlu1 %v1153_v58, %s4061_s5  ;;  %v5345_v8 = vrot.slane %v2220_v36, %v4324_v29  ;;  %v2732_v58 = vcombine.high %v5117_v41, %v5100_v26  ;;  %v5364_v26 = vrot.slane %v2883_v50, %v4324_v29  ;;  %v5369_v36 = vpop.permute.xlu1 %848  ;;  %v6727_v50 = vld [vmem:[#allocation31_spill] sm:$0xff] }
 0x203   : > { %v5367_v41 = vrot.slane %v2764_v40, %v4324_v29  ;;  %6722 = vst [vmem:[#allocation51_spill] sm:$0xff] %v5369_v36  ;;  %v1323_v0 = vcombine.low %v6728_v45, %v6727_v50  ;;  %v5382_v40 = vpop.permute.xlu0 %3075  ;;  %v1284_v45 = vcombine.high %v5237_v19, %v5240_v44  ;;  %v6735_v44 = vld [vmem:[#allocation58_spill] sm:$0xff] }
 0x204   : > { %v2241_v37 = vcombine.low %v5352_v28, %v5345_v8  ;;  %v5374_v35 = vrot.slane %v2732_v58, %v4324_v29  ;;  %6729 = vst [vmem:[#allocation48_spill] sm:$0xff] %v5382_v40  ;;  %v2915_v61 = vcombine.low %v5361_v59, %v5364_v26  ;;  %v6731_v58 = vld [vmem:[#allocation30_spill] sm:$0xff]  ;;  %v5400_v40 = vrot.slane %v1307_v51, %v4285_v57  ;;  %v6738_v51 = vld [vmem:[#allocation59_spill] sm:$0xff] }
 0x205   : > { %v5403_v5 = vrot.slane %v1323_v0, %v4285_v57  ;;  %v1867_v39 = vcombine.low %v6738_v51, %v6737_v47  ;;  %v6740_v0 = vld [vmem:[#allocation60_spill] sm:$0xff]  ;;  %v1828_v51 = vcombine.high %v5291_v22, %v5294_v24  ;;  %v6742_v22 = vld [vmem:[#allocation87_spill] sm:$0xff] }
 0x206   : > { %3295 = vrot.lane.b32.xlu0 %v1827_v27, %s4063_s13  ;;  %3233 = vrot.lane.b32.xlu1 %v1697_v63, %s4061_s5  ;;  %v6723_v27 = vld [vmem:[#allocation22_spill] sm:$0xff]  ;;  %v6724_v63 = vld [vmem:[#allocation16_spill] sm:$0xff]  ;;  %v1883_v53 = vcombine.low %v6740_v0, %v6739_v33  ;;  %v1698_v0 = vcombine.high %v5318_v16, %v5303_v42  ;;  %v6743_v24 = vld [vmem:[#allocation83_spill] sm:$0xff] }
 0x207   : > { %v1291_v3 = vcombine.low %v6724_v63, %v6723_v27  ;;  %v5392_v63 = vpop.permute.xlu1 %859  ;;  %v2379_v42 = vcombine.low %v6743_v24, %v6742_v22  ;;  %v6744_v16 = vld [vmem:[#allocation88_spill] sm:$0xff]  ;;  %v2372_v24 = vcombine.high %v5333_v14, %v5336_v54  ;;  %v6764_v22 = vld [vmem:[#allocation45_spill] sm:$0xff] }
 0x208   : > { %6732 = vst [vmem:[#allocation44_spill] sm:$0xff] %v5392_v63  ;;  %v6745_v33 = vld [vmem:[#allocation84_spill] sm:$0xff] }
 0x209   : > { %v5397_v50 = vrot.slane %v1291_v3, %v4285_v57  ;;  %v6736_v3 = vld [vmem:[#allocation54_spill] sm:$0xff]  ;;  %v2395_v47 = vcombine.low %v6745_v33, %v6744_v16  ;;  %v2242_v33 = vcombine.high %v5352_v28, %v5345_v8  ;;  %v5487_v8 = vrot.slane %v2379_v42, %v4285_v57 }
 0x20a   : > { %3299 = vrot.lane.b32.xlu0 %v2371_v34, %s4063_s13  ;;  %3237 = vrot.lane.b32.xlu1 %v2241_v37, %s4061_s5  ;;  %v2785_v34 = vcombine.low %v5374_v35, %v5367_v41  ;;  %v6730_v37 = vld [vmem:[#allocation34_spill] sm:$0xff]  ;;  %v1851_v27 = vcombine.low %v6736_v3, %v6735_v44 }
 0x20b   : > { %v1339_v52 = vcombine.low %v6731_v58, %v6730_v37  ;;  %v6733_v58 = vld [vmem:[#allocation57_spill] sm:$0xff]  ;;  %v6734_v37 = vld [vmem:[#allocation52_spill] sm:$0xff]  ;;  %v5490_v28 = vrot.slane %v2395_v47, %v4285_v57  ;;  %v2939_v47 = vcombine.low %v5231_v4, %v5326_v43  ;;  %v6763_v16 = vld [vmem:[#allocation50_spill] sm:$0xff] }
 0x20c   : > { %v1835_v19 = vcombine.low %v6734_v37, %v6733_v58  ;;  %v1748_v37 = vcombine.high %v6764_v22, %v6763_v16 }
 0x20e   : > { %3303 = vrot.lane.b32.xlu0 %v2915_v61, %s4063_s13  ;;  %3241 = vrot.lane.b32.xlu1 %v2785_v34, %s4061_s5  ;;  %v1154_v61 = vcombine.high %v5247_v46, %v5250_v48  ;;  %v5410_v34 = vrot.slane %v1339_v52, %v4285_v57  ;;  %v1220_v52 = vcombine.high %v5179_v17, %v5170_v10  ;;  %s3725_s5 = scalar_lea.sflag [#allocation4], %s4196_s26 }
 0x20f   : > { %v1252_v46 = vcombine.high %v5173_v30, %v5176_v11  ;;  %v1355_v48 = vcombine.low %v5397_v50, %v5400_v40  ;;  %v5440_v17 = vrot.slane %v1851_v27, %v4285_v57  ;;  %v5443_v10 = vrot.slane %v1867_v39, %v4285_v57  ;;  %v5445_v30 = vpop.permute.xlu1 %870  ;;  %v6746_v27 = vld [vmem:[#allocation89_spill] sm:$0xff] }
 0x210   : > { %v5405_v1 = vpop.permute.xlu0 %3079  ;;  %6741 = vst [vmem:[#allocation39_spill] sm:$0xff] %v5445_v30  ;;  %v5448_v11 = vrot.slane %v1883_v53, %v4285_v57  ;;  %v2427_v39 = vcombine.low %v4766_v31, %v4860_v9  ;;  %v5461_v44 = vrot.slane %v1220_v52, %v4324_v29  ;;  %v1764_v31 = vcombine.high %v5210_v60, %v5213_v49 }
 0x211   : > { %v1796_v52 = vcombine.high %v5216_v7, %v5219_v25  ;;  %v2923_v60 = vcombine.low %v5193_v62, %v5282_v55  ;;  %v6758_v62 = vld [vmem:[#allocation9_spill] sm:$0xff]  ;;  %v1388_v22 = vcombine.high %v5403_v5, %v5410_v34 }
 0x212   : > { %3323 = vrot.lane.b32.xlu0 %v1284_v45, %s4064_s15  ;;  %3261 = vrot.lane.b32.xlu1 %v1154_v61, %s4062_s12  ;;  %v1387_v45 = vcombine.low %v5403_v5, %v5410_v34  ;;  %v5437_v61 = vrot.slane %v1835_v19, %v4285_v57  ;;  %v2411_v19 = vcombine.low %v6746_v27, %v4809_v18  ;;  %v6762_v27 = vld [vmem:[#allocation40_spill] sm:$0xff] }
 0x213   : > { %v1931_v54 = vcombine.low %v5443_v10, %v5448_v11  ;;  %v5498_v49 = vrot.slane %v2427_v39, %v4285_v57  ;;  %v5502_v25 = vpop.permute.xlu1 %881 }
 0x214   : > { %v5428_v3 = vpop.permute.xlu0 %3099  ;;  %v1899_v9 = vcombine.low %v5437_v61, %v5440_v17  ;;  %v5482_v14 = vrot.slane %v1387_v45, %v4324_v29  ;;  %v5495_v7 = vrot.slane %v2411_v19, %v4285_v57  ;;  %6747 = vst [vmem:[#allocation76_spill] sm:$0xff] %v5502_v25  ;;  %v5526_v19 = vrot.slane %v1796_v52, %v4324_v29 }
 0x215   : > { %v5543_v52 = vrot.slane %v2923_v60, %v4285_v57 }
 0x216   : > { %3327 = vrot.lane.b32.xlu0 %v1828_v51, %s4064_s15  ;;  %3265 = vrot.lane.b32.xlu1 %v1698_v0, %s4062_s12  ;;  %v5470_v51 = vrot.slane %v1252_v46, %v4324_v29  ;;  %v5473_v0 = vrot.slane %v1355_v48, %v4324_v29  ;;  %v2916_v46 = vcombine.high %v5361_v59, %v5364_v26 }
 0x217   : > { %v2971_v48 = vcombine.low %v5392_v63, %v5502_v25  ;;  %v5521_v26 = vrot.slane %v1764_v31, %v4324_v29  ;;  %v5529_v39 = vrot.slane %v1899_v9, %v4324_v29  ;;  %v2340_v31 = vcombine.high %v5263_v12, %v5266_v2  ;;  %v5556_v12 = vpop.permute.xlu1 %3069 }
 0x218   : > { %v5463_v53 = vpop.permute.xlu0 %3103  ;;  %v1285_v42 = vcombine.low %v5461_v44, %v5470_v51  ;;  %v1419_v59 = vcombine.low %v5473_v0, %v5482_v14  ;;  %v5546_v9 = vrot.slane %v2939_v47, %v4285_v57  ;;  %6748 = vst [vmem:[#allocation72_spill] sm:$0xff] %v5556_v12 }
 0x219   : > { %v1829_v2 = vcombine.low %v5521_v26, %v5526_v19  ;;  %v1830_v34 = vcombine.high %v5521_v26, %v5526_v19 }
 0x21a   : > { %3331 = vrot.lane.b32.xlu0 %v2372_v24, %s4064_s15  ;;  %3269 = vrot.lane.b32.xlu1 %v2242_v33, %s4062_s12  ;;  %v2955_v33 = vcombine.low %v5369_v36, %v5445_v30  ;;  %v2786_v24 = vcombine.high %v5374_v35, %v5367_v41  ;;  %v5532_v41 = vrot.slane %v1931_v54, %v4324_v29  ;;  %v6751_v36 = vld [vmem:[#allocation15_spill] sm:$0xff] }
 0x21b   : > { %v2308_v35 = vcombine.high %v5255_v15, %v5258_v6  ;;  %v5552_v15 = vrot.slane %v2971_v48, %v4285_v57  ;;  %v2987_v63 = vcombine.low %v5543_v52, %v5546_v9  ;;  %v5596_v30 = vpop.permute.xlu1 %3073 }
 0x21c   : > { %v5512_v45 = vpop.permute.xlu0 %3107  ;;  %v5549_v54 = vrot.slane %v2955_v33, %v4285_v57  ;;  %v1963_v60 = vcombine.low %v5529_v39, %v5532_v41  ;;  %v5568_v33 = vrot.slane %v2340_v31, %v4324_v29  ;;  %6753 = vst [vmem:[#allocation69_spill] sm:$0xff] %v5596_v30 }
 0x21d   : > { %v5565_v47 = vrot.slane %v2308_v35, %v4324_v29 }
 0x21e   : > { %3335 = vrot.lane.b32.xlu0 %v2916_v46, %s4064_s15  ;;  %3273 = vrot.lane.b32.xlu1 %v2786_v24, %s4062_s12  ;;  %v2443_v46 = vcombine.low %v5487_v8, %v5490_v28  ;;  %v2475_v24 = vcombine.low %v5495_v7, %v5498_v49  ;;  %v3019_v35 = vcombine.low %v5549_v54, %v5552_v15  ;;  %s3967_s12 = scalar_lea.vmem %s6397_s18, 1024 }
 0x21f   : > { %p3968_p8 = scmp.ne.s32.totalorder %s6397_s18, %s3967_s12 }
 0x220   : > { %v5554_v6 = vpop.permute.xlu0 %3111  ;;  %v5571_v48 = vrot.slane %v2443_v46, %v4324_v29  ;;  %v5574_v12 = vrot.slane %v2475_v24, %v4324_v29  ;;  %v6749_v46 = vld [vmem:[#allocation14_spill] sm:$0xff]  ;;  %v6750_v24 = vld [vmem:[#allocation12_spill] sm:$0xff] }
 0x221   : > { %v1188_v25 = vcombine.high %v6750_v24, %v6749_v46  ;;  %v5607_v46 = vrot.slane %v2987_v63, %v4324_v29  ;;  %v6754_v24 = vld [vmem:[#allocation11_spill] sm:$0xff]  ;;  %p3969_p11 = pnand %p3968_p8, %p6848_p9 }
 0x222   : > { %3355 = vrot.lane.b32.xlu0 %v1285_v42, %s4065_s16  ;;  %3293 = vrot.lane.b32.xlu1 %v1419_v59, %s4063_s13  ;;  %v2852_v42 = vcombine.high %v5306_v20, %v5309_v13  ;;  %v2884_v59 = vcombine.high %v5312_v38, %v5315_v56  ;;  %v6752_v20 = vld [vmem:[#allocation13_spill] sm:$0xff]  ;;  %v2373_v38 = vcombine.low %v5565_v47, %v5568_v33 }
 0x223   : > { %v1204_v13 = vcombine.high %v6752_v20, %v6751_v36  ;;  %v2507_v56 = vcombine.low %v5571_v48, %v5574_v12  ;;  %v5610_v36 = vrot.slane %v3019_v35, %v4324_v29  ;;  %v6755_v20 = vld [vmem:[#allocation8_spill] sm:$0xff]  ;;  %v5617_v43 = vrot.slane %v1188_v25, %v4285_v57  ;;  %p3970_p0 = pneg %p3969_p11 }
 0x224   : > { %v5584_v31 = vpop.permute.xlu0 %3131  ;;  %v1172_v30 = vcombine.high %v6755_v20, %v6754_v24  ;;  %v1700_v25 = vcombine.high %v6701_v32, %v6700_v23  ;;  %v6759_v24 = vld [vmem:[#allocation38_spill] sm:$0xff]  ;;  %v6760_v20 = vld [vmem:[#allocation36_spill] sm:$0xff] }
 0x226   : > { %3359 = vrot.lane.b32.xlu0 %v1829_v2, %s4065_s16  ;;  %3297 = vrot.lane.b32.xlu1 %v1963_v60, %s4063_s13  ;;  %v5601_v2 = vrot.slane %v2852_v42, %v4324_v29  ;;  %v5604_v60 = vrot.slane %v2884_v59, %v4324_v29  ;;  %v5620_v42 = vrot.slane %v1204_v13, %v4285_v57  ;;  %v5622_v59 = vpop.permute.xlu1 %3077 }
 0x227   : > { %6756 = vst [vmem:[#allocation66_spill] sm:$0xff] %v5622_v59  ;;  %v1716_v13 = vcombine.high %v6760_v20, %v6759_v24  ;;  %v6761_v59 = vld [vmem:[#allocation47_spill] sm:$0xff]  ;;  %v5643_v58 = vrot.slane %v1172_v30, %v4285_v57  ;;  %v1356_v30 = vcombine.high %v5397_v50, %v5400_v40  ;;  %v5663_v16 = vrot.slane %v1700_v25, %v4285_v57  ;;  %v6769_v24 = vld [vmem:[#allocation81_spill] sm:$0xff] }
 0x228   : > { %v5598_v4 = vpop.permute.xlu0 %3135  ;;  %v2917_v35 = vcombine.low %v5601_v2, %v5604_v60  ;;  %v1732_v18 = vcombine.high %v6762_v27, %v6761_v59  ;;  %v6770_v20 = vld [vmem:[#allocation77_spill] sm:$0xff] }
 0x229   : > { %v5666_v59 = vrot.slane %v1716_v13, %v4285_v57  ;;  %v2276_v13 = vcombine.high %v6770_v20, %v6769_v24  ;;  %v5702_v19 = vrot.slane %v1356_v30, %v4324_v29  ;;  %v2374_v30 = vcombine.high %v5565_v47, %v5568_v33  ;;  %v6774_v33 = vld [vmem:[#allocation97_spill] sm:$0xff]  ;;  %v6778_v20 = vld [vmem:[#allocation24_spill] sm:$0xff] }
 0x22a   : > { %3363 = vrot.lane.b32.xlu0 %v2373_v38, %s4065_s16  ;;  %3301 = vrot.lane.b32.xlu1 %v2507_v56, %s4063_s13  ;;  %v3051_v38 = vcombine.low %v5607_v46, %v5610_v36  ;;  %v6757_v56 = vld [vmem:[#allocation10_spill] sm:$0xff] }
 0x22b   : > { %v1156_v55 = vcombine.high %v6758_v62, %v6757_v56  ;;  %v1267_v62 = vcombine.low %v5617_v43, %v5620_v42  ;;  %v6768_v56 = vld [vmem:[#allocation70_spill] sm:$0xff]  ;;  %v1779_v26 = vcombine.low %v5663_v16, %v5666_v59 }
 0x22c   : > { %v5624_v63 = vpop.permute.xlu0 %3139  ;;  %v2260_v25 = vcombine.high %v6768_v56, %v6711_v21  ;;  %v6777_v56 = vld [vmem:[#allocation96_spill] sm:$0xff] }
 0x22d   : > { %v5656_v27 = vrot.slane %v1156_v55, %v4285_v57  ;;  %v5671_v55 = vrot.slane %v1732_v18, %v4285_v57  ;;  %v6766_v18 = vld [vmem:[#allocation73_spill] sm:$0xff]  ;;  %v5743_v47 = vrot.slane %v1779_v26, %v4324_v29 }
 0x22e   : > { %3367 = vrot.lane.b32.xlu0 %v2917_v35, %s4065_s16  ;;  %3305 = vrot.lane.b32.xlu1 %v3051_v38, %s4063_s13  ;;  %v1286_v35 = vcombine.high %v5461_v44, %v5470_v51  ;;  %v1420_v38 = vcombine.high %v5473_v0, %v5482_v14  ;;  %v5674_v44 = vrot.slane %v1748_v37, %v4285_v57  ;;  %v6767_v14 = vld [vmem:[#allocation68_spill] sm:$0xff]  ;;  %s3971_s13 = sshll.u32 %s4072_s9, 4  ;;  %s3972_s13 = int_to_ptr.vmem [resolvable:$false] %s3971_s13 }
 0x22f   : > { %v1235_v5 = vcombine.low %v5656_v27, %v5643_v58  ;;  %v1964_v51 = vcombine.high %v5529_v39, %v5532_v41  ;;  %v5687_v0 = vrot.slane %v1267_v62, %v4324_v29  ;;  %v2244_v37 = vcombine.high %v6767_v14, %v6766_v18  ;;  %p3974_p6 = scmp.lt.s32.totalorder %s6397_s18, %s3972_s13 }
 0x230   : > { %v5647_v23 = vpop.permute.xlu1 %3081  ;;  %v5649_v32 = vpop.permute.xlu0 %3143  ;;  %v5705_v39 = vrot.slane %v1388_v22, %v4324_v29  ;;  %v1811_v21 = vcombine.low %v5671_v55, %v5674_v44  ;;  %v1900_v41 = vcombine.high %v5437_v61, %v5440_v17  ;;  %v1932_v62 = vcombine.high %v5443_v10, %v5448_v11 }
 0x231   : > { %v2508_v22 = vcombine.high %v5571_v48, %v5574_v12  ;;  %v5725_v14 = vrot.slane %v2244_v37, %v4285_v57  ;;  %v5728_v61 = vrot.slane %v2260_v25, %v4285_v57  ;;  %v5731_v17 = vrot.slane %v2276_v13, %v4285_v57  ;;  %v6775_v48 = vld [vmem:[#allocation95_spill] sm:$0xff]  ;;  %v6776_v37 = vld [vmem:[#allocation28_spill] sm:$0xff]  ;;  %v6779_v13 = vld [vmem:[#allocation29_spill] sm:$0xff] }
 0x232   : > { %3387 = vrot.lane.b32.xlu0 %v1286_v35, %s4066_s17  ;;  %3325 = vrot.lane.b32.xlu1 %v1420_v38, %s4064_s15  ;;  %v6771_v35 = vld [vmem:[#allocation82_spill] sm:$0xff]  ;;  %v6772_v38 = vld [vmem:[#allocation80_spill] sm:$0xff]  ;;  %v1421_v12 = vcombine.low %v5702_v19, %v5705_v39  ;;  %v5750_v25 = vrot.slane %v1811_v21, %v4324_v29  ;;  %v5753_v24 = vrot.slane %v1900_v41, %v4324_v29 }
 0x233   : > { %v3052_v21 = vcombine.high %v5607_v46, %v5610_v36  ;;  %v2323_v41 = vcombine.low %v5725_v14, %v5728_v61 }
 0x234   : > { %v5678_v50 = vpop.permute.xlu1 %3101  ;;  %v5680_v40 = vpop.permute.xlu0 %3163 }
 0x235   : > { %6765 = vst [vmem:[#allocation74_spill] sm:$0xff] %v5678_v50  ;;  %v2292_v50 = vcombine.high %v6772_v38, %v6771_v35  ;;  %v2820_v35 = vcombine.high %v6779_v13, %v6778_v20  ;;  %v6780_v38 = vld [vmem:[#allocation19_spill] sm:$0xff]  ;;  %v2476_v20 = vcombine.high %v5495_v7, %v5498_v49 }
 0x236   : > { %3391 = vrot.lane.b32.xlu0 %v1830_v34, %s4066_s17  ;;  %3329 = vrot.lane.b32.xlu1 %v1964_v51, %s4064_s15  ;;  %v5722_v51 = vrot.slane %v1235_v5, %v4324_v29  ;;  %v2788_v5 = vcombine.high %v6775_v48, %v6774_v33  ;;  %v2918_v33 = vcombine.high %v5601_v2, %v5604_v60  ;;  %v6782_v2 = vld [vmem:[#allocation85_spill] sm:$0xff]  ;;  %v6783_v60 = vld [vmem:[#allocation86_spill] sm:$0xff] }
 0x237   : > { %v5734_v10 = vrot.slane %v2292_v50, %v4285_v57  ;;  %v2804_v50 = vcombine.high %v6777_v56, %v6776_v37  ;;  %v5772_v37 = vrot.slane %v1932_v62, %v4324_v29  ;;  %v2444_v56 = vcombine.high %v5487_v8, %v5490_v28 }
 0x238   : > { %v5713_v18 = vpop.permute.xlu1 %3105  ;;  %v5715_v34 = vpop.permute.xlu0 %3167  ;;  %v1287_v11 = vcombine.low %v5722_v51, %v5687_v0  ;;  %v6784_v46 = vcombine.low %v6782_v2, %v6783_v60  ;;  %v5786_v62 = vrot.slane %v2788_v5, %v4285_v57  ;;  %v5794_v28 = vrot.slane %v2820_v35, %v4285_v57 }
 0x239   : > { %6773 = vst [vmem:[#allocation71_spill] sm:$0xff] %v5713_v18  ;;  %v2355_v48 = vcombine.low %v5731_v17, %v5734_v10  ;;  %v5789_v13 = vrot.slane %v2804_v50, %v4285_v57  ;;  %v6786_v50 = vld [vmem:[#allocation20_spill] sm:$0xff]  ;;  %v1831_v35 = vcombine.low %v5743_v47, %v5750_v25  ;;  %v5820_v2 = vrot.slane %v2323_v41, %v4324_v29 }
 0x23a   : > { %3395 = vrot.lane.b32.xlu0 %v2374_v30, %s4066_s17  ;;  %3333 = vrot.lane.b32.xlu1 %v2508_v22, %s4064_s15  ;;  %v6781_v30 = vld [vmem:[#allocation26_spill] sm:$0xff]  ;;  %v3546_v36 = vsel %vm3539_vm0, %v6784_v46, %v5405_v1  ;;  %v2988_v41 = vcombine.high %v5543_v52, %v5546_v9  ;;  %v6794_v52 = vld [vmem:[#allocation16_spill] sm:$0xff] }
 0x23b   : > { %v2836_v22 = vcombine.high %v6781_v30, %v6780_v38  ;;  %v3555_v8 = vsel %vm3548_vm1, %v3546_v36, %v5554_v6  ;;  %v6785_v38 = vld [vmem:[#allocation49_spill] sm:$0xff]  ;;  %v5823_v60 = vrot.slane %v2355_v48, %v4324_v29  ;;  %v2867_v46 = vcombine.low %v5786_v62, %v5789_v13 }
 0x23c   : > { %v5759_v26 = vpop.permute.xlu1 %3109  ;;  %v5761_v18 = vpop.permute.xlu0 %3171  ;;  %v3564_v7 = vsel %vm3557_vm2, %v3555_v8, %v5649_v32  ;;  %v6787_v30 = vld [vmem:[#allocation21_spill] sm:$0xff]  ;;  %v3020_v48 = vcombine.high %v5549_v54, %v5552_v15  ;;  %v6796_v54 = vld [vmem:[#allocation18_spill] sm:$0xff] }
 0x23d   : > { %v5797_v1 = vrot.slane %v2836_v22, %v4285_v57  ;;  %v1965_v22 = vcombine.low %v5753_v24, %v5772_v37 }
 0x23e   : > { %3399 = vrot.lane.b32.xlu0 %v2918_v33, %s4066_s17  ;;  %3337 = vrot.lane.b32.xlu1 %v3052_v21, %s4064_s15  ;;  %v6788_v33 = vcombine.low %v6786_v50, %v6787_v30  ;;  %s3973_s15 = scalar_lea.vmem %s3972_s13, 2048 }
 0x23f   : > { %p3975_p13 = scmp.lt.s32.totalorder %s3973_s15, %s3967_s12 }
 0x240   : > { %v5801_v49 = vpop.permute.xlu1 %3113  ;;  %v3176_v5 = vpop.permute.xlu0 %3175  ;;  %v3540_v6 = vsel %vm3539_vm0, %v6788_v33, %v6785_v38  ;;  %v6791_v38 = vld [vmem:[#allocation43_spill] sm:$0xff]  ;;  %v6793_v33 = vld [vmem:[#allocation22_spill] sm:$0xff] }
 0x241   : > { %v5809_v21 = vsel %vm3566_vm3, %v3564_v7, %v3176_v5  ;;  %v3549_v32 = vsel %vm3548_vm1, %v3540_v6, %v5428_v3  ;;  %v5830_v3 = vrot.slane %v2444_v56, %v4324_v29  ;;  %v6789_v56 = vld [vmem:[#allocation41_spill] sm:$0xff]  ;;  %v6790_v5 = vld [vmem:[#allocation42_spill] sm:$0xff]  ;;  %v1292_v9 = vcombine.high %v6794_v52, %v6793_v33  ;;  %v6801_v52 = vld [vmem:[#allocation31_spill] sm:$0xff]  ;;  %p3976_p2 = por %p3975_p13, %p3974_p6 }
 0x242   : > { %3419 = vrot.lane.b32.xlu0 %v1287_v11, %s4067_s22  ;;  %3357 = vrot.lane.b32.xlu1 %v1421_v12, %s4065_s16  ;;  %v3558_v36 = vsel %vm3557_vm2, %v3549_v32, %v5584_v31  ;;  %v5833_v11 = vrot.slane %v2476_v20, %v4324_v29  ;;  %v2899_v12 = vcombine.low %v5794_v28, %v5797_v1  ;;  %v6795_v6 = vld [vmem:[#allocation25_spill] sm:$0xff] }
 0x243   : > { %v3567_v8 = vsel %vm3566_vm3, %v3558_v36, %v5680_v40  ;;  %v6792_v20 = vcombine.low %v6790_v5, %v6791_v38  ;;  %v1308_v15 = vcombine.high %v6796_v54, %v6795_v6  ;;  %v2375_v36 = vcombine.low %v5820_v2, %v5823_v60  ;;  %v6797_v38 = vld [vmem:[#allocation48_spill] sm:$0xff]  ;;  %v6802_v6 = vld [vmem:[#allocation27_spill] sm:$0xff]  ;;  %p3977_p5 = pnand %p3976_p2, %p3970_p0 }
 0x244   : > { %v5843_v7 = vpop.permute.xlu1 %3133  ;;  %v3196_v31 = vpop.permute.xlu0 %3195  ;;  %v5881_v5 = vrot.slane %v3020_v48, %v4324_v29  ;;  %v1324_v54 = vcombine.high %v6802_v6, %v6801_v52  ;;  %v5900_v48 = vrot.slane %v1292_v9, %v4285_v57  ;;  %v6806_v52 = vld [vmem:[#allocation52_spill] sm:$0xff] }
 0x245   : > { %v3542_v50 = vsel %vm3539_vm0, %v6792_v20, %v6789_v56  ;;  %v5851_v30 = vsel %vm3575_vm4, %v3567_v8, %v3196_v31  ;;  %v2509_v8 = vcombine.low %v5830_v3, %v5833_v11  ;;  %v5868_v31 = vrot.slane %v2867_v46, %v4324_v29  ;;  %v6798_v20 = vld [vmem:[#allocation63_spill] sm:$0xff] }
 0x246   : > { %v3551_v40 = vsel %vm3548_vm1, %v3542_v50, %v5463_v53  ;;  %3423 = vrot.lane.b32.xlu0 %v1831_v35, %s4067_s22  ;;  %3361 = vrot.lane.b32.xlu1 %v1965_v22, %s4065_s16  ;;  %v5875_v22 = vrot.slane %v2899_v12, %v4324_v29  ;;  %v6799_v50 = vld [vmem:[#allocation64_spill] sm:$0xff]  ;;  %v6803_v12 = vld [vmem:[#allocation34_spill] sm:$0xff] }
 0x247   : > { %v3560_v32 = vsel %vm3557_vm2, %v3551_v40, %v5598_v4  ;;  %v5878_v4 = vrot.slane %v2988_v41, %v4324_v29  ;;  %v6800_v46 = vcombine.low %v6798_v20, %v6799_v50  ;;  %v6804_v40 = vld [vmem:[#allocation30_spill] sm:$0xff] }
 0x248   : > { %v3569_v56 = vsel %vm3566_vm3, %v3560_v32, %v5715_v34  ;;  %v5872_v53 = vpop.permute.xlu1 %3137  ;;  %v3200_v35 = vpop.permute.xlu0 %3199  ;;  %v1340_v32 = vcombine.high %v6804_v40, %v6803_v12  ;;  %v1422_v40 = vcombine.high %v5702_v19, %v5705_v39 }
 0x249   : > { %v3544_v33 = vsel %vm3539_vm0, %v6800_v46, %v6797_v38  ;;  %v5889_v34 = vsel %vm3575_vm4, %v3569_v56, %v3200_v35  ;;  %v5903_v38 = vrot.slane %v1308_v15, %v4285_v57  ;;  %v5919_v15 = vrot.slane %v1324_v54, %v4285_v57 }
 0x24a   : > { %v3553_v41 = vsel %vm3548_vm1, %v3544_v33, %v5512_v45  ;;  %3427 = vrot.lane.b32.xlu0 %v2375_v36, %s4067_s22  ;;  %3365 = vrot.lane.b32.xlu1 %v2509_v8, %s4065_s16  ;;  %v2919_v45 = vcombine.low %v5868_v31, %v5875_v22  ;;  %v3053_v36 = vcombine.low %v5878_v4, %v5881_v5  ;;  %v6805_v33 = vld [vmem:[#allocation57_spill] sm:$0xff] }
 0x24b   : > { %v3562_v56 = vsel %vm3557_vm2, %v3553_v41, %v5624_v63  ;;  %v5922_v63 = vrot.slane %v1340_v32, %v4285_v57  ;;  %v1268_v8 = vcombine.high %v5617_v43, %v5620_v42  ;;  %v1371_v46 = vcombine.low %v5900_v48, %v5903_v38  ;;  %v6807_v41 = vld [vmem:[#allocation58_spill] sm:$0xff]  ;;  %v6810_v43 = vld [vmem:[#allocation59_spill] sm:$0xff] }
 0x24c   : > { %v3571_v35 = vsel %vm3566_vm3, %v3562_v56, %v5761_v18  ;;  %v5909_v20 = vpop.permute.xlu1 %3141  ;;  %v3204_v50 = vpop.permute.xlu0 %3203  ;;  %v1236_v18 = vcombine.high %v5656_v27, %v5643_v58  ;;  %v1836_v6 = vcombine.high %v6806_v52, %v6805_v33  ;;  %v1288_v32 = vcombine.high %v5722_v51, %v5687_v0  ;;  %v6808_v58 = vld [vmem:[#allocation54_spill] sm:$0xff]  ;;  %v6809_v56 = vld [vmem:[#allocation61_spill] sm:$0xff] }
 0x24d   : > { %v5916_v9 = vsel %vm3575_vm4, %v3571_v35, %v3204_v50  ;;  %v1852_v27 = vcombine.high %v6808_v58, %v6807_v41  ;;  %v1868_v42 = vcombine.high %v6810_v43, %v6809_v56  ;;  %v6811_v35 = vld [vmem:[#allocation65_spill] sm:$0xff]  ;;  %v6812_v50 = vld [vmem:[#allocation60_spill] sm:$0xff]  ;;  %v1403_v33 = vcombine.low %v5919_v15, %v5922_v63  ;;  %v6820_v56 = vld [vmem:[#allocation94_spill] sm:$0xff] }
 0x24e   : > { %3431 = vrot.lane.b32.xlu0 %v2919_v45, %s4067_s22  ;;  %3369 = vrot.lane.b32.xlu1 %v3053_v36, %s4065_s16  ;;  %v1884_v45 = vcombine.high %v6812_v50, %v6811_v35  ;;  %v1780_v0 = vcombine.high %v5663_v16, %v5666_v59  ;;  %v5957_v19 = vrot.slane %v1371_v46, %v4324_v29  ;;  %v6814_v46 = vld [vmem:[#allocation87_spill] sm:$0xff]  ;;  %v6819_v58 = vld [vmem:[#allocation89_spill] sm:$0xff]  ;;  %v6821_v43 = vld [vmem:[#allocation90_spill] sm:$0xff] }
 0x24f   : > { %v5960_v39 = vrot.slane %v1236_v18, %v4324_v29  ;;  %v5963_v51 = vrot.slane %v1268_v8, %v4324_v29  ;;  %v5968_v52 = vrot.slane %v1836_v6, %v4285_v57  ;;  %v1966_v16 = vcombine.high %v5753_v24, %v5772_v37  ;;  %v6815_v6 = vld [vmem:[#allocation83_spill] sm:$0xff]  ;;  %v6816_v24 = vld [vmem:[#allocation88_spill] sm:$0xff] }
 0x250   : > { %v5934_v54 = vpop.permute.xlu1 %3145  ;;  %v3208_v12 = vpop.permute.xlu0 %3207  ;;  %v1832_v59 = vcombine.high %v5743_v47, %v5750_v25  ;;  %v5977_v18 = vrot.slane %v1852_v27, %v4285_v57  ;;  %v5980_v8 = vrot.slane %v1868_v42, %v4285_v57  ;;  %v6817_v37 = vld [vmem:[#allocation84_spill] sm:$0xff]  ;;  %v5996_v47 = vrot.slane %v1403_v33, %v4324_v29  ;;  %v6818_v25 = vld [vmem:[#allocation91_spill] sm:$0xff] }
 0x251   : > { %v5948_v36 = vsel %vm3575_vm4, %v5809_v21, %v3208_v12  ;;  %v1812_v21 = vcombine.high %v5671_v55, %v5674_v44  ;;  %v5983_v55 = vrot.slane %v1884_v45, %v4285_v57  ;;  %v2396_v41 = vcombine.high %v6817_v37, %v6816_v24  ;;  %v6824_v37 = vld [vmem:[#allocation46_spill] sm:$0xff] }
 0x252   : > { %3389 = vrot.lane.b32.xlu1 %v1422_v40, %s4066_s17  ;;  %3451 = vrot.lane.b32.xlu0 %v1288_v32, %s4068_s23  ;;  %6813 = vst [vmem:[#allocation67_spill] sm:$0xff] %v5980_v8  ;;  %v2380_v32 = vcombine.high %v6815_v6, %v6814_v46  ;;  %v2412_v27 = vcombine.high %v6819_v58, %v6818_v25  ;;  %v6823_v6 = vld [vmem:[#allocation23_spill] sm:$0xff] }
 0x253   : > { %v2510_v50 = vcombine.high %v5830_v3, %v5833_v11  ;;  %v2376_v45 = vcombine.high %v5820_v2, %v5823_v60  ;;  %v6011_v33 = vrot.slane %v1780_v0, %v4324_v29  ;;  %v6022_v3 = vrot.slane %v1812_v21, %v4324_v29  ;;  %v6822_v21 = vld [vmem:[#allocation53_spill] sm:$0xff]  ;;  %v6826_v58 = vld [vmem:[#allocation39_spill] sm:$0xff] }
 0x254   : > { %v5970_v12 = vpop.permute.xlu1 %3165  ;;  %v3228_v40 = vpop.permute.xlu0 %3227  ;;  %v6025_v2 = vrot.slane %v2380_v32, %v4285_v57  ;;  %v6028_v60 = vrot.slane %v2396_v41, %v4285_v57  ;;  %v1423_v11 = vcombine.low %v5957_v19, %v5996_v47  ;;  %v6035_v0 = vrot.slane %v2412_v27, %v4285_v57  ;;  %v6825_v41 = vld [vmem:[#allocation17_spill] sm:$0xff] }
 0x255   : > { %v5987_v44 = vsel %vm3584_vm5, %v5851_v30, %v3228_v40  ;;  %v2428_v30 = vcombine.high %v6821_v43, %v6820_v56  ;;  %v1289_v40 = vcombine.low %v5960_v39, %v5963_v51  ;;  %v2924_v32 = vcombine.high %v6823_v6, %v6822_v21  ;;  %v6827_v56 = vld [vmem:[#allocation51_spill] sm:$0xff] }
 0x256   : > { %3393 = vrot.lane.b32.xlu1 %v1966_v16, %s4066_s17  ;;  %3455 = vrot.lane.b32.xlu0 %v1832_v59, %s4068_s23  ;;  %v1915_v16 = vcombine.low %v5968_v52, %v5977_v18  ;;  %v1947_v59 = vcombine.low %v5980_v8, %v5983_v55  ;;  %v2920_v24 = vcombine.high %v5868_v31, %v5875_v22 }
 0x257   : > { %v2940_v25 = vcombine.high %v6825_v41, %v6824_v37  ;;  %v2956_v43 = vcombine.high %v6827_v56, %v6826_v58  ;;  %v1833_v6 = vcombine.low %v6011_v33, %v6022_v3  ;;  %v2324_v37 = vcombine.high %v5725_v14, %v5728_v61 }
 0x258   : > { %v6002_v42 = vpop.permute.xlu1 %3169  ;;  %v3232_v35 = vpop.permute.xlu0 %3231  ;;  %v6059_v31 = vrot.slane %v1915_v16, %v4324_v29  ;;  %v6062_v22 = vrot.slane %v1947_v59, %v4324_v29  ;;  %v2356_v41 = vcombine.high %v5731_v17, %v5734_v10  ;;  %v2459_v16 = vcombine.low %v6025_v2, %v6028_v60 }
 0x259   : > { %v6019_v46 = vsel %vm3584_vm5, %v5889_v34, %v3232_v35  ;;  %v6038_v34 = vrot.slane %v2428_v30, %v4285_v57  ;;  %v6828_v35 = vld [vmem:[#allocation76_spill] sm:$0xff]  ;;  %v3054_v30 = vcombine.high %v5878_v4, %v5881_v5  ;;  %v6831_v5 = vld [vmem:[#allocation93_spill] sm:$0xff]  ;;  %v6082_v14 = vrot.slane %v2924_v32, %v4285_v57 }
 0x25a   : > { %3397 = vrot.lane.b32.xlu1 %v2510_v50, %s4066_s17  ;;  %3459 = vrot.lane.b32.xlu0 %v2376_v45, %s4068_s23  ;;  %v6829_v50 = vld [vmem:[#allocation44_spill] sm:$0xff]  ;;  %v6087_v17 = vrot.slane %v2940_v25, %v4285_v57 }
 0x25b   : > { %v2972_v45 = vcombine.high %v6829_v50, %v6828_v35  ;;  %v6830_v4 = vld [vmem:[#allocation92_spill] sm:$0xff]  ;;  %v2491_v59 = vcombine.low %v6035_v0, %v6038_v34  ;;  %v6835_v50 = vld [vmem:[#allocation33_spill] sm:$0xff] }
 0x25c   : > { %v6050_v27 = vpop.permute.xlu1 %3173  ;;  %v3236_v8 = vpop.permute.xlu0 %3235  ;;  %v6833_v35 = vld [vmem:[#allocation72_spill] sm:$0xff] }
 0x25d   : > { %v6056_v21 = vsel %vm3584_vm5, %v5916_v9, %v3236_v8  ;;  %v6832_v9 = vcombine.low %v6830_v4, %v6831_v5  ;;  %v6093_v10 = vrot.slane %v2972_v45, %v4285_v57  ;;  %v6834_v32 = vld [vmem:[#allocation32_spill] sm:$0xff]  ;;  %v6837_v45 = vld [vmem:[#allocation74_spill] sm:$0xff]  ;;  %v6115_v5 = vrot.slane %v2356_v41, %v4324_v29 }
 0x25e   : > { %3401 = vrot.lane.b32.xlu1 %v3054_v30, %s4066_s17  ;;  %3463 = vrot.lane.b32.xlu0 %v2920_v24, %s4068_s23  ;;  %v6836_v30 = vcombine.low %v6834_v32, %v6835_v50 }
 0x25f   : > { %v3547_v8 = vsel %vm3539_vm0, %v6832_v9, %v5647_v23  ;;  %v6090_v23 = vrot.slane %v2956_v43, %v4285_v57  ;;  %v1967_v57 = vcombine.low %v6059_v31, %v6062_v22 }
 0x260   : > { %v3556_v61 = vsel %vm3548_vm1, %v3547_v8, %v5801_v49  ;;  %v3178_v58 = vpop.permute.xlu1 %3177  ;;  %v3240_v56 = vpop.permute.xlu0 %3239  ;;  %v3541_v49 = vsel %vm3539_vm0, %v6836_v30, %v6833_v35  ;;  %v6122_v8 = vrot.slane %v2459_v16, %v4324_v29  ;;  %v6839_v16 = vld [vmem:[#allocation55_spill] sm:$0xff] }
 0x261   : > { %v3565_v24 = vsel %vm3557_vm2, %v3556_v61, %v5934_v54  ;;  %v3591_v43 = vsel %vm3584_vm5, %v5948_v36, %v3240_v56  ;;  %v3550_v4 = vsel %vm3548_vm1, %v3541_v49, %v6837_v45  ;;  %v6112_v54 = vrot.slane %v2324_v37, %v4324_v29  ;;  %v6838_v61 = vld [vmem:[#allocation69_spill] sm:$0xff] }
 0x262   : > { %v3574_v25 = vsel %vm3566_vm3, %v3565_v24, %v3178_v58  ;;  %3421 = vrot.lane.b32.xlu1 %v1423_v11, %s4067_s22  ;;  %3483 = vrot.lane.b32.xlu0 %v1289_v40, %s4069_s24  ;;  %v2868_v36 = vcombine.high %v5786_v62, %v5789_v13  ;;  %v3559_v9 = vsel %vm3557_vm2, %v3550_v4, %v5843_v7  ;;  %v6840_v24 = vld [vmem:[#allocation56_spill] sm:$0xff] }
 0x263   : > { %v6125_v11 = vrot.slane %v2491_v59, %v4324_v29  ;;  %v2900_v40 = vcombine.high %v5794_v28, %v5797_v1  ;;  %v3003_v37 = vcombine.low %v6082_v14, %v6087_v17  ;;  %v3035_v41 = vcombine.low %v6090_v23, %v6093_v10  ;;  %v6842_v1 = vld [vmem:[#allocation71_spill] sm:$0xff] }
 0x264   : > { %v3568_v62 = vsel %vm3566_vm3, %v3559_v9, %v5970_v12  ;;  %v3198_v13 = vpop.permute.xlu1 %3197  ;;  %v3260_v7 = vpop.permute.xlu0 %3259  ;;  %v6841_v58 = vcombine.low %v6839_v16, %v6840_v24  ;;  %v2377_v50 = vcombine.low %v6112_v54, %v6115_v5  ;;  %v2882_v30 = vrot.slane %v2868_v36, %v4324_v29  ;;  %v6844_v9 = vld [vmem:[#allocation78_spill] sm:$0xff] }
 0x265   : > { %v3577_v56 = vsel %vm3575_vm4, %v3568_v62, %v3198_v13  ;;  %v3594_v28 = vsel %vm3593_vm6, %v5987_v44, %v3260_v7  ;;  %v2511_v32 = vcombine.low %v6122_v8, %v6125_v11  ;;  %v2914_v4 = vrot.slane %v2900_v40, %v4324_v29  ;;  %v6845_v62 = vld [vmem:[#allocation79_spill] sm:$0xff] }
 0x266   : > { %v3543_v59 = vsel %vm3539_vm0, %v6841_v58, %v6838_v61  ;;  %3425 = vrot.lane.b32.xlu1 %v1967_v57, %s4067_s22  ;;  %3487 = vrot.lane.b32.xlu0 %v1833_v6, %s4069_s24  ;;  %v3011_v57 = vrot.slane %v3003_v37, %v4324_v29  ;;  %v3043_v6 = vrot.slane %v3035_v41, %v4324_v29 }
 0x267   : > { %v3552_v35 = vsel %vm3548_vm1, %v3543_v59, %v6842_v1  ;;  %v6846_v13 = vcombine.low %v6844_v9, %v6845_v62  ;;  %v2921_v58 = vcombine.low %v2882_v30, %v2914_v4  ;;  %v3004_v62 = vcombine.high %v6082_v14, %v6087_v17 }
 0x268   : > { %v3561_v12 = vsel %vm3557_vm2, %v3552_v35, %v5872_v53  ;;  %v3202_v49 = vpop.permute.xlu1 %3201  ;;  %v3264_v45 = vpop.permute.xlu0 %3263  ;;  %v6843_v53 = vld [vmem:[#allocation66_spill] sm:$0xff]  ;;  %v3055_v24 = vcombine.low %v3011_v57, %v3043_v6 }
 0x269   : > { %v3570_v44 = vsel %vm3566_vm3, %v3561_v12, %v6002_v42  ;;  %v3545_v7 = vsel %vm3539_vm0, %v6846_v13, %v6843_v53  ;;  %v3596_v36 = vsel %vm3593_vm6, %v6019_v46, %v3264_v45  ;;  %v3018_v14 = vrot.slane %v3004_v62, %v4324_v29 }
 0x26a   : > { %v3579_v61 = vsel %vm3575_vm4, %v3570_v44, %v3202_v49  ;;  %v3554_v42 = vsel %vm3548_vm1, %v3545_v7, %v5759_v26  ;;  %3429 = vrot.lane.b32.xlu1 %v2511_v32, %s4067_s22  ;;  %3491 = vrot.lane.b32.xlu0 %v2377_v50, %s4069_s24  ;;  %v1968_v50 = vcombine.high %v6059_v31, %v6062_v22  ;;  %vm3715_vm0 = vcmask 523520  }
 0x26b   : > { %v3563_v40 = vsel %vm3557_vm2, %v3554_v42, %v5909_v20  ;;  %v1424_v20 = vcombine.high %v5957_v19, %v5996_v47  ;;  %v1834_v19 = vcombine.high %v6011_v33, %v6022_v3  ;;  %v1372_v47 = vcombine.high %v5900_v48, %v5903_v38  ;;  %v6847_v38 = vld [vmem:[#allocation67_spill] sm:$0xff] }
 0x26c   : > { %v3572_v37 = vsel %vm3566_vm3, %v3563_v40, %v6050_v27  ;;  %v3206_v41 = vpop.permute.xlu1 %3205  ;;  %v3268_v16 = vpop.permute.xlu0 %3267  ;;  %v1290_v27 = vcombine.high %v5960_v39, %v5963_v51  ;;  %v2512_v31 = vcombine.high %v6122_v8, %v6125_v11  ;;  %v2378_v33 = vcombine.high %v6112_v54, %v6115_v5 }
 0x26d   : > { %v3581_v59 = vsel %vm3575_vm4, %v3572_v37, %v3206_v41  ;;  %v3598_v46 = vsel %vm3593_vm6, %v6056_v21, %v3268_v16  ;;  %v1916_v48 = vcombine.high %v5968_v52, %v5977_v18  ;;  %v3056_v8 = vcombine.high %v3011_v57, %v3043_v6 }
 0x26e   : > { %3433 = vrot.lane.b32.xlu1 %v3055_v24, %s4067_s22  ;;  %3495 = vrot.lane.b32.xlu0 %v2921_v58, %s4069_s24  ;;  %v2922_v11 = vcombine.high %v2882_v30, %v2914_v4  ;;  %v1386_v54 = vrot.slane %v1372_v47, %v4324_v29  ;;  %v2492_v30 = vcombine.high %v6035_v0, %v6038_v34 }
 0x26f   : > { %v1930_v52 = vrot.slane %v1916_v48, %v4324_v29 }
 0x270   : > { %v3210_v26 = vpop.permute.xlu1 %3209  ;;  %v3272_v1 = vpop.permute.xlu0 %3271  ;;  %v2506_v34 = vrot.slane %v2492_v30, %v4324_v29 }
 0x271   : > { %v3583_v35 = vsel %vm3575_vm4, %v3574_v25, %v3210_v26  ;;  %v3600_v12 = vsel %vm3593_vm6, %v3591_v43, %v3272_v1  ;;  %v1404_v25 = vcombine.high %v5919_v15, %v5922_v63  ;;  %v1948_v15 = vcombine.high %v6847_v38, %v5983_v55 }
 0x272   : > { %3453 = vrot.lane.b32.xlu1 %v1424_v20, %s4068_s23  ;;  %3515 = vrot.lane.b32.xlu0 %v1290_v27, %s4070_s25  ;;  %v2460_v55 = vcombine.high %v6025_v2, %v6028_v60  ;;  %v3036_v2 = vcombine.high %v6090_v23, %v6093_v10 }
 0x273   : > { %v1418_v5 = vrot.slane %v1404_v25, %v4324_v29  ;;  %v1962_v18 = vrot.slane %v1948_v15, %v4324_v29 }
 0x274   : > { %v3230_v21 = vpop.permute.xlu1 %3229  ;;  %v3292_v32 = vpop.permute.xlu0 %3291  ;;  %v2474_v0 = vrot.slane %v2460_v55, %v4324_v29  ;;  %v3050_v17 = vrot.slane %v3036_v2, %v4324_v29 }
 0x275   : > { %v3586_v39 = vsel %vm3584_vm5, %v3577_v56, %v3230_v21  ;;  %v3603_v51 = vsel %vm3602_vm7, %v3594_v28, %v3292_v32  ;;  %v1425_v6 = vcombine.low %v1386_v54, %v1418_v5  ;;  %v1969_v9 = vcombine.low %v1930_v52, %v1962_v18 }
 0x276   : > { %3457 = vrot.lane.b32.xlu1 %v1968_v50, %s4068_s23  ;;  %3519 = vrot.lane.b32.xlu0 %v1834_v19, %s4070_s25  ;;  %v2513_v40 = vcombine.low %v2474_v0, %v2506_v34  ;;  %v3057_v16 = vcombine.low %v3018_v14, %v3050_v17  ;;  %v1426_v26 = vcombine.high %v1386_v54, %v1418_v5 }
 0x277   : > { %v2514_v19 = vcombine.high %v2474_v0, %v2506_v34 }
 0x278   : > { %v3234_v43 = vpop.permute.xlu1 %3233  ;;  %v3296_v44 = vpop.permute.xlu0 %3295 }
 0x279   : > { %v3588_v3 = vsel %vm3584_vm5, %v3579_v61, %v3234_v43  ;;  %v3605_v22 = vsel %vm3602_vm7, %v3596_v36, %v3296_v44  ;;  %v3058_v43 = vcombine.high %v3018_v14, %v3050_v17 }
 0x27a   : > { %3461 = vrot.lane.b32.xlu1 %v2512_v31, %s4068_s23  ;;  %3523 = vrot.lane.b32.xlu0 %v2378_v33, %s4070_s25 }
 0x27c   : > { %v3238_v63 = vpop.permute.xlu1 %3237  ;;  %v3300_v56 = vpop.permute.xlu0 %3299 }
 0x27d   : > { %v3590_v28 = vsel %vm3584_vm5, %v3581_v59, %v3238_v63  ;;  %v3607_v49 = vsel %vm3602_vm7, %v3598_v46, %v3300_v56 }
 0x27e   : > { %3465 = vrot.lane.b32.xlu1 %v3056_v8, %s4068_s23  ;;  %3527 = vrot.lane.b32.xlu0 %v2922_v11, %s4070_s25 }
 0x280   : > { %v3242_v45 = vpop.permute.xlu1 %3241  ;;  %v3304_v57 = vpop.permute.xlu0 %3303 }
 0x281   : > { %v3592_v4 = vsel %vm3584_vm5, %v3583_v35, %v3242_v45  ;;  %v3609_v53 = vsel %vm3602_vm7, %v3600_v12, %v3304_v57  ;;  %v1970_v35 = vcombine.high %v1930_v52, %v1962_v18 }
 0x282   : > { %3485 = vrot.lane.b32.xlu1 %v1425_v6, %s4069_s24 }
 0x284   : > { %v3262_v60 = vpop.permute.xlu1 %3261  ;;  %v3324_v13 = vpop.permute.xlu0 %3323 }
 0x285   : > { %v3595_v7 = vsel %vm3593_vm6, %v3586_v39, %v3262_v60  ;;  %v3612_v61 = vsel %vm3611_vm8, %v3603_v51, %v3324_v13 }
 0x286   : > { %3489 = vrot.lane.b32.xlu1 %v1969_v9, %s4069_s24 }
 0x288   : > { %v3266_v36 = vpop.permute.xlu1 %3265  ;;  %v3328_v42 = vpop.permute.xlu0 %3327 }
 0x289   : > { %v3597_v23 = vsel %vm3593_vm6, %v3588_v3, %v3266_v36  ;;  %v3614_v10 = vsel %vm3611_vm8, %v3605_v22, %v3328_v42 }
 0x28a   : > { %3493 = vrot.lane.b32.xlu1 %v2513_v40, %s4069_s24 }
 0x28c   : > { %v3270_v37 = vpop.permute.xlu1 %3269  ;;  %v3332_v41 = vpop.permute.xlu0 %3331 }
 0x28d   : > { %v3599_v24 = vsel %vm3593_vm6, %v3590_v28, %v3270_v37  ;;  %v3616_v58 = vsel %vm3611_vm8, %v3607_v49, %v3332_v41 }
 0x28e   : > { %3497 = vrot.lane.b32.xlu1 %v3057_v16, %s4069_s24 }
 0x290   : > { %v3274_v59 = vpop.permute.xlu1 %3273  ;;  %v3336_v46 = vpop.permute.xlu0 %3335 }
 0x291   : > { %v3601_v29 = vsel %vm3593_vm6, %v3592_v4, %v3274_v59  ;;  %v3618_v1 = vsel %vm3611_vm8, %v3609_v53, %v3336_v46 }
 0x292   : > { %3517 = vrot.lane.b32.xlu1 %v1426_v26, %s4070_s25 }
 0x294   : > { %v3294_v20 = vpop.permute.xlu1 %3293  ;;  %v3356_v27 = vpop.permute.xlu0 %3355 }
 0x295   : > { %v3604_v12 = vsel %vm3602_vm7, %v3595_v7, %v3294_v20  ;;  %v3621_v21 = vsel %vm3620_vm9, %v3612_v61, %v3356_v27 }
 0x296   : > { %3521 = vrot.lane.b32.xlu1 %v1970_v35, %s4070_s25 }
 0x298   : > { %v3298_v32 = vpop.permute.xlu1 %3297  ;;  %v3360_v50 = vpop.permute.xlu0 %3359 }
 0x299   : > { %v3606_v39 = vsel %vm3602_vm7, %v3597_v23, %v3298_v32  ;;  %v6252_v51 = vsel %vm3620_vm9, %v3614_v10, %v3360_v50 }
 0x29a   : > { %3525 = vrot.lane.b32.xlu1 %v2514_v19, %s4070_s25 }
 0x29c   : > { %v3302_v47 = vpop.permute.xlu1 %3301  ;;  %v3364_v25 = vpop.permute.xlu0 %3363 }
 0x29d   : > { %v3608_v44 = vsel %vm3602_vm7, %v3599_v24, %v3302_v47  ;;  %v6257_v31 = vsel %vm3620_vm9, %v3616_v58, %v3364_v25 }
 0x29e   : > { %3529 = vrot.lane.b32.xlu1 %v3058_v43, %s4070_s25 }
 0x2a0   : > { %v3306_v33 = vpop.permute.xlu1 %3305  ;;  %v3368_v3 = vpop.permute.xlu0 %3367 }
 0x2a1   : > { %v3610_v22 = vsel %vm3602_vm7, %v3601_v29, %v3306_v33  ;;  %v6262_v48 = vsel %vm3620_vm9, %v3618_v1, %v3368_v3 }
 0x2a4   : > { %v3326_v38 = vpop.permute.xlu1 %3325  ;;  %v3388_v15 = vpop.permute.xlu0 %3387 }
 0x2a5   : > { %v3613_v63 = vsel %vm3611_vm8, %v3604_v12, %v3326_v38  ;;  %v3630_v59 = vsel %vm3629_vm10, %v3621_v21, %v3388_v15 }
 0x2a8   : > { %v3330_v56 = vpop.permute.xlu1 %3329  ;;  %v3392_v8 = vpop.permute.xlu0 %3391 }
 0x2a9   : > { %v3615_v11 = vsel %vm3611_vm8, %v3606_v39, %v3330_v56  ;;  %v3632_v27 = vsel %vm3629_vm10, %v6252_v51, %v3392_v8 }
 0x2ac   : > { %v3334_v54 = vpop.permute.xlu1 %3333  ;;  %v3396_v5 = vpop.permute.xlu0 %3395 }
 0x2ad   : > { %v3617_v28 = vsel %vm3611_vm8, %v3608_v44, %v3334_v54  ;;  %v3634_v39 = vsel %vm3629_vm10, %v6257_v31, %v3396_v5 }
 0x2b0   : > { %v3338_v49 = vpop.permute.xlu1 %3337  ;;  %v6267_v52 = vpop.permute.xlu0 %3399 }
 0x2b1   : > { %v3619_v18 = vsel %vm3611_vm8, %v3610_v22, %v3338_v49  ;;  %v3636_v3 = vsel %vm3629_vm10, %v6262_v48, %v6267_v52 }
 0x2b4   : > { %v3358_v55 = vpop.permute.xlu1 %3357  ;;  %v3420_v30 = vpop.permute.xlu0 %3419 }
 0x2b5   : > { %v6271_v45 = vsel %vm3620_vm9, %v3613_v63, %v3358_v55  ;;  %v3639_v46 = vsel %vm3638_vm11, %v3630_v59, %v3420_v30 }
 0x2b8   : > { %v3362_v57 = vpop.permute.xlu1 %3361  ;;  %v3424_v6 = vpop.permute.xlu0 %3423 }
 0x2b9   : > { %v6274_v4 = vsel %vm3620_vm9, %v3615_v11, %v3362_v57  ;;  %v3641_v12 = vsel %vm3638_vm11, %v3632_v27, %v3424_v6 }
 0x2bc   : > { %v3366_v53 = vpop.permute.xlu1 %3365  ;;  %v3428_v9 = vpop.permute.xlu0 %3427 }
 0x2bd   : > { %v6277_v62 = vsel %vm3620_vm9, %v3617_v28, %v3366_v53  ;;  %v3643_v47 = vsel %vm3638_vm11, %v3634_v39, %v3428_v9 }
 0x2c0   : > { %v3370_v2 = vpop.permute.xlu1 %3369  ;;  %v3432_v60 = vpop.permute.xlu0 %3431 }
 0x2c1   : > { %v6280_v13 = vsel %vm3620_vm9, %v3619_v18, %v3370_v2  ;;  %v3645_v22 = vsel %vm3638_vm11, %v3636_v3, %v3432_v60 }
 0x2c4   : > { %v6282_v0 = vpop.permute.xlu1 %3389  ;;  %v3452_v34 = vpop.permute.xlu0 %3451 }
 0x2c5   : > { %v3648_v26 = vsel %vm3647_vm12, %v3639_v46, %v3452_v34  ;;  %v3631_v28 = vsel %vm3629_vm10, %v6271_v45, %v6282_v0 }
 0x2c8   : > { %v6284_v7 = vpop.permute.xlu1 %3393  ;;  %v3456_v61 = vpop.permute.xlu0 %3455 }
 0x2c9   : > { %v3650_v21 = vsel %vm3647_vm12, %v3641_v12, %v3456_v61  ;;  %v3633_v30 = vsel %vm3629_vm10, %v6274_v4, %v6284_v7 }
 0x2cc   : > { %v6286_v36 = vpop.permute.xlu1 %3397  ;;  %v3460_v42 = vpop.permute.xlu0 %3459 }
 0x2cd   : > { %v3652_v25 = vsel %vm3647_vm12, %v3643_v47, %v3460_v42  ;;  %v3635_v2 = vsel %vm3629_vm10, %v6277_v62, %v6286_v36 }
 0x2d0   : > { %v6288_v40 = vpop.permute.xlu1 %3401  ;;  %v3464_v14 = vpop.permute.xlu0 %3463 }
 0x2d1   : > { %v3654_v38 = vsel %vm3647_vm12, %v3645_v22, %v3464_v14  ;;  %v3637_v62 = vsel %vm3629_vm10, %v6280_v13, %v6288_v40 }
 0x2d4   : > { %v3422_v17 = vpop.permute.xlu1 %3421  ;;  %v3484_v23 = vpop.permute.xlu0 %3483 }
 0x2d5   : > { %v3657_v29 = vsel %vm3656_vm13, %v3648_v26, %v3484_v23  ;;  %v3640_v49 = vsel %vm3638_vm11, %v3631_v28, %v3422_v17 }
 0x2d8   : > { %v3426_v10 = vpop.permute.xlu1 %3425  ;;  %v3488_v37 = vpop.permute.xlu0 %3487 }
 0x2d9   : > { %v3659_v32 = vsel %vm3656_vm13, %v3650_v21, %v3488_v37  ;;  %v3642_v6 = vsel %vm3638_vm11, %v3633_v30, %v3426_v10 }
 0x2dc   : > { %v6290_v41 = vpop.permute.xlu1 %3429  ;;  %v3492_v16 = vpop.permute.xlu0 %3491 }
 0x2dd   : > { %v3661_v43 = vsel %vm3656_vm13, %v3652_v25, %v3492_v16  ;;  %v3644_v60 = vsel %vm3638_vm11, %v3635_v2, %v6290_v41 }
 0x2e0   : > { %v6292_v24 = vpop.permute.xlu1 %3433  ;;  %v3496_v58 = vpop.permute.xlu0 %3495 }
 0x2e1   : > { %v3663_v15 = vsel %vm3656_vm13, %v3654_v38, %v3496_v58  ;;  %v3646_v36 = vsel %vm3638_vm11, %v3637_v62, %v6292_v24 }
 0x2e4   : > { %v3454_v1 = vpop.permute.xlu1 %3453  ;;  %v3516_v20 = vpop.permute.xlu0 %3515 }
 0x2e5   : > { %v3666_v35 = vsel %vm3665_vm14, %v3657_v29, %v3516_v20  ;;  %v3649_v52 = vsel %vm3647_vm12, %v3640_v49, %v3454_v1 }
 0x2e6   : > { %3675 = vst.msk [vmem:[%s6304_s3] sm:$0xff] %vm3674_vm15, %v3666_v35  ;;  %3691 = vrot.lane.b32.xlu0 %v3666_v35, %s4071_s4 }
 0x2e8   : > { %v3458_v50 = vpop.permute.xlu1 %3457  ;;  %v3520_v19 = vpop.permute.xlu0 %3519 }
 0x2e9   : > { %v3668_v51 = vsel %vm3665_vm14, %v3659_v32, %v3520_v19  ;;  %v3651_v45 = vsel %vm3647_vm12, %v3642_v6, %v3458_v50 }
 0x2ea   : > { %3677 = vst.msk [vmem:[%s6304_s3 + $0x10] sm:$0xff] %vm3674_vm15, %v3668_v51  ;;  %3695 = vrot.lane.b32.xlu0 %v3668_v51, %s4071_s4 }
 0x2ec   : > { %v3462_v44 = vpop.permute.xlu1 %3461  ;;  %v3524_v33 = vpop.permute.xlu0 %3523 }
 0x2ed   : > { %v3670_v31 = vsel %vm3665_vm14, %v3661_v43, %v3524_v33  ;;  %v3653_v0 = vsel %vm3647_vm12, %v3644_v60, %v3462_v44 }
 0x2ee   : > { %3679 = vst.msk [vmem:[%s6304_s3 + $0x20] sm:$0xff] %vm3674_vm15, %v3670_v31  ;;  %3699 = vrot.lane.b32.xlu0 %v3670_v31, %s4071_s4 }
 0x2f0   : > { %v3466_v63 = vpop.permute.xlu1 %3465  ;;  %v3528_v56 = vpop.permute.xlu0 %3527 }
 0x2f1   : > { %v3672_v8 = vsel %vm3665_vm14, %v3663_v15, %v3528_v56  ;;  %v3655_v42 = vsel %vm3647_vm12, %v3646_v36, %v3466_v63 }
 0x2f2   : > { %3681 = vst.msk [vmem:[%s6304_s3 + $0x30] sm:$0xff] %vm3674_vm15, %v3672_v8  ;;  %3703 = vrot.lane.b32.xlu0 %v3672_v8, %s4071_s4 }
 0x2f4   : > { %v3486_v48 = vpop.permute.xlu1 %3485 }
 0x2f5   : > { %v3658_v18 = vsel %vm3656_vm13, %v3649_v52, %v3486_v48 }
 0x2f8   : > { %v3490_v11 = vpop.permute.xlu1 %3489 }
 0x2f9   : > { %v3660_v53 = vsel %vm3656_vm13, %v3651_v45, %v3490_v11 }
 0x2fc   : > { %v3494_v54 = vpop.permute.xlu1 %3493 }
 0x2fd   : > { %v3662_v34 = vsel %vm3656_vm13, %v3653_v0, %v3494_v54 }
 0x300   : > { %v3498_v5 = vpop.permute.xlu1 %3497 }
 0x301   : > { %v3664_v14 = vsel %vm3656_vm13, %v3655_v42, %v3498_v5 }
 0x304   : > { %v3518_v55 = vpop.permute.xlu1 %3517 }
 0x305   : > { %v3667_v57 = vsel %vm3665_vm14, %v3658_v18, %v3518_v55 }
 0x306   : > { %3676 = vst.msk [vmem:[%s6304_s3 + $0x8] sm:$0xff] %vm3674_vm15, %v3667_v57  ;;  %3693 = vrot.lane.b32.xlu1 %v3667_v57, %s4071_s4 }
 0x308   : > { %v3522_v9 = vpop.permute.xlu1 %3521 }
 0x309   : > { %v3669_v4 = vsel %vm3665_vm14, %v3660_v53, %v3522_v9 }
 0x30a   : > { %3678 = vst.msk [vmem:[%s6304_s3 + $0x18] sm:$0xff] %vm3674_vm15, %v3669_v4  ;;  %3697 = vrot.lane.b32.xlu1 %v3669_v4, %s4071_s4 }
 0x30c   : > { %v3526_v7 = vpop.permute.xlu1 %3525 }
 0x30d   : > { %v3671_v61 = vsel %vm3665_vm14, %v3662_v34, %v3526_v7 }
 0x30e   : > { %3680 = vst.msk [vmem:[%s6304_s3 + $0x28] sm:$0xff] %vm3674_vm15, %v3671_v61  ;;  %3701 = vrot.lane.b32.xlu1 %v3671_v61, %s4071_s4 }
 0x310   : > { %v3530_v17 = vpop.permute.xlu1 %3529 }
 0x311   : > { %v3673_v13 = vsel %vm3665_vm14, %v3664_v14, %v3530_v17 }
 0x312   : > { %3682 = vst.msk [vmem:[%s6304_s3 + $0x38] sm:$0xff] %vm3674_vm15, %v3673_v13  ;;  %3705 = vrot.lane.b32.xlu1 %v3673_v13, %s4071_s4 }
 0x358   : > { %v3692_v40 = vpop.permute.xlu0 %3691 }
 0x359   : > { %3716 = vst.msk [vmem:[%s6304_s3] sm:$0xff] %vm3715_vm0, %v3692_v40 }
 0x35c   : > { %v3696_v23 = vpop.permute.xlu0 %3695 }
 0x35d   : > { %3718 = vst.msk [vmem:[%s6304_s3 + $0x10] sm:$0xff] %vm3715_vm0, %v3696_v23 }
 0x360   : > { %v3700_v10 = vpop.permute.xlu0 %3699 }
 0x361   : > { %3720 = vst.msk [vmem:[%s6304_s3 + $0x20] sm:$0xff] %vm3715_vm0, %v3700_v10 }
 0x364   : > { %v3704_v37 = vpop.permute.xlu0 %3703 }
 0x365   : > { %3722 = vst.msk [vmem:[%s6304_s3 + $0x30] sm:$0xff] %vm3715_vm0, %v3704_v37 }
 0x378   : > { %v3694_v41 = vpop.permute.xlu1 %3693 }
 0x379   : > { %3717 = vst.msk [vmem:[%s6304_s3 + $0x8] sm:$0xff] %vm3715_vm0, %v3694_v41 }
 0x37c   : > { %v3698_v16 = vpop.permute.xlu1 %3697 }
 0x37d   : > { %3719 = vst.msk [vmem:[%s6304_s3 + $0x18] sm:$0xff] %vm3715_vm0, %v3698_v16 }
 0x380   : > { %v3702_v24 = vpop.permute.xlu1 %3701 }
 0x381   : > { %3721 = vst.msk [vmem:[%s6304_s3 + $0x28] sm:$0xff] %vm3715_vm0, %v3702_v24 }
 0x384   : > { %v3706_v58 = vpop.permute.xlu1 %3705 }
 0x385   : > { %3723 = vst.msk [vmem:[%s6304_s3 + $0x38] sm:$0xff] %vm3715_vm0, %v3706_v58 }
 0x386   : > { %3980 = shalt.err (!%p3977_p5)
}
 0x387   : > { %s3981_s16 = scalar_lea.hbm %s6395_s2, 1024  ;;  %s3985_s23 = scalar_lea.hbm %s6450_s1, 2048 }
 0x388   : > { %p3982_p4 = scmp.ne.s32.totalorder %s6395_s2, %s3981_s16  ;;  %p3986_p12 = scmp.lt.u32.totalorder %s6395_s2, %s6450_s1 }
 0x389   : > { %p3987_p1 = scmp.lt.u32.totalorder %s3985_s23, %s3981_s16  ;;  %p3989_p8 = scmp.lt.u32.totalorder %s3981_s16, %s6395_s2 }
 0x38a   : > { %p3983_p7 = pnand %p3982_p4, %p6848_p9 }
 0x38b   : > { %p3988_p3 = por %p3987_p1, %p3986_p12 }
 0x38c   : > { %p3984_p10 = pneg %p3983_p7 }
 0x38d   : > { %p3990_p11 = por %p3989_p8, %p3988_p3 }
 0x38f   : > { %p3991_p0 = pnand %p3990_p11, %p3984_p10 }
 0x391   : > { %3994 = shalt.err (!%p3991_p0)
}
 0x392   : > { %s4073_s3 = smov 128  }
 0x393   : > { %3856 = dma.vmem_to_hbm [thread:$0]  (%p6848_p9), %s6397_s18, 1024, %s6395_s2, %s3725_s5, %s4073_s3, %s4073_s3, %s4059_s30  }
 0x394 PF: > { %s3758_s4 = sand.u32 1, %s4029_s6   ;;  %p6849_p6 = scmp.ne.s32.totalorder %s6559_s21, 0 }
 0x395   : > { %p6850_p13 = scmp.ge.s32.totalorder %s4049_s11, 2  ;;  %s3759_s28 = scalar_lea.sflag [#allocation4], %s3758_s4 }
 0x397   : > { %p3863_p2 = pnand %p6850_p13, %p6849_p6 }
 0x399   : > { %4024 = dma.done.wait (!%p3863_p2), %s3759_s28, 1024  }
 0x39a   : > { %4026 = vsyncadd (!%p3863_p2), %s3759_s28, 4294966272  ;;  %s17_s11 = sadd.s32 1, %s4049_s11   ;;  %s6851_s6 = smov %s4033_s7 }
 0x39b   : > { %p14_p5 = scmp.ge.s32.totalorder %s17_s11, 4   ;;  %s6852_s7 = smov %s4037_s8 }
 0x39c   : > { %s6853_s8 = smov %s4140_s20  ;;  %s6854_s9 = smov %s4045_s10 }
 0x39d   : > { %s6855_s10 = smov %s6857_s14  ;;  %16 = sbr.rel (!%p14_p5) target bundleno = 6 (0x6), region = 69 }
 0x3a4   :  { %3764 = vsyncpa [#allocation3], 1 }
 0x3a5   :  { %3766 = vsyncpa [#allocation3 + $0x1], 1 }
 0x3a6   :  { %3767 = vsyncpa [#allocation4], 1 }
 0x3a7   :  { %3769 = vsyncpa [#allocation4 + $0x1], 1 }

</bundles_post_ra>
